<compile_context>
chip_gen: v7x
topology: tpu7x:2x2x1
jax: 0.10.0
libtpu: 0.0.40
codegen_flags: <defaults>
</compile_context>

<pallas_src>
import functools
import math

import numpy as np
import jax
import jax.numpy as jnp
from jax import lax
from jax.experimental import pallas as pl
from jax.experimental.pallas import tpu as pltpu


# ----------------------------- kernel helpers --------------------------------
def _softmax_rows(s):
  m = jnp.max(s, axis=-1, keepdims=True)
  e = jnp.exp(s - m)
  return e * pl.reciprocal(jnp.sum(e, axis=-1, keepdims=True), approx=True)


def _layer_norm(v, gamma, beta):
  mu = jnp.mean(v, axis=-1, keepdims=True)
  var = jnp.mean((v - mu) * (v - mu), axis=-1, keepdims=True)
  return (v - mu) * lax.rsqrt(var + 1e-5) * gamma + beta


def _mha(q, k, v, *, num_heads, mask_fn=None):
  """q: (Tq, D) f32, k/v: (S, D) f32 -> (Tq, D) f32 (head-major concat)."""
  tq, d_model = q.shape
  s_kv = k.shape[0]
  hd = d_model // num_heads
  scale = 1.0 / math.sqrt(hd)
  # Leading head axis + batched einsums (no per-head lane slices / concat,
  # transpose of K folded into the contraction).
  qh = q.astype(jnp.bfloat16).reshape(tq, num_heads, hd).transpose(1, 0, 2)
  kh = k.astype(jnp.bfloat16).reshape(s_kv, num_heads, hd).transpose(1, 0, 2)
  vh = v.astype(jnp.bfloat16).reshape(s_kv, num_heads, hd).transpose(1, 0, 2)
  s = jnp.einsum("hqd,hkd->hqk", qh, kh,
                 preferred_element_type=jnp.float32) * scale       # (H,Tq,S)
  if mask_fn is not None:
    s = mask_fn(s)
  p = _softmax_rows(s)
  o = jnp.einsum("hqk,hkd->hqd", p.astype(jnp.bfloat16), vh,
                 preferred_element_type=jnp.float32)               # (H,Tq,hd)
  return o.transpose(1, 0, 2).reshape(tq, d_model)


# ------------------ stage 1: masked self-attention + add&norm ----------------
def _self_attn_kernel(y_ref, keep1_ref,
                      wq_ref, bq_ref, wk_ref, bk_ref, wv_ref, bv_ref,
                      wo_ref, bo_ref, ln1_ref,
                      y1_ref, *, num_heads, q_tile, inv_keep):
  q_start = pl.multiple_of(pl.program_id(1) * q_tile, q_tile)

  y_full = y_ref[0]                                # (S, D)  K/V source
  y_tile = y_ref[0, pl.ds(q_start, q_tile), :]     # (Tq, D) query rows / residual
  y_bf = y_full.astype(jnp.bfloat16)

  q = jnp.dot(y_tile.astype(jnp.bfloat16), wq_ref[...],
              preferred_element_type=jnp.float32) + bq_ref[...]
  k = jnp.dot(y_bf, wk_ref[...], preferred_element_type=jnp.float32) + bk_ref[...]
  v = jnp.dot(y_bf, wv_ref[...], preferred_element_type=jnp.float32) + bv_ref[...]

  def causal(scores):
    # In-kernel causal mask: global query row vs key column (no (S,S) DMA).
    row = q_start + lax.broadcasted_iota(jnp.int32, scores.shape, 1)
    col = lax.broadcasted_iota(jnp.int32, scores.shape, 2)
    return jnp.where(col <= row, scores, -1e9)

  vals = _mha(q, k, v, num_heads=num_heads, mask_fn=causal)
  attn = jnp.dot(vals.astype(jnp.bfloat16), wo_ref[...],
                 preferred_element_type=jnp.float32) + bo_ref[...]
  attn = attn * (keep1_ref[0].astype(jnp.float32) * inv_keep)      # dropout1
  y1 = _layer_norm(attn + y_tile, ln1_ref[0:1, :], ln1_ref[1:2, :])
  y1_ref[0] = y1.astype(y1_ref.dtype)


# ------------- stage 2: cross-attention + add&norm + FFN + add&norm ----------
def _cross_ffn_kernel(x_ref, y1_ref, keep2_ref, keepf_ref, keep3_ref,
                      wq_ref, bq_ref, wk_ref, bk_ref, wv_ref, bv_ref,
                      wo_ref, bo_ref, ln2_ref,
                      wf1_ref, bf1_ref, wf2_ref, bf2_ref, ln3_ref,
                      out_ref, *, num_heads, q_tile, inv_keep):
  q_start = pl.multiple_of(pl.program_id(1) * q_tile, q_tile)

  x_tile = x_ref[0]                                 # (Tq, D) query source
  y1_full = y1_ref[0]                               # (S, D)  K/V source
  y1_tile = y1_ref[0, pl.ds(q_start, q_tile), :]    # (Tq, D) residual rows
  y1_bf = y1_full.astype(jnp.bfloat16)

  q = jnp.dot(x_tile.astype(jnp.bfloat16), wq_ref[...],
              preferred_element_type=jnp.float32) + bq_ref[...]
  k = jnp.dot(y1_bf, wk_ref[...], preferred_element_type=jnp.float32) + bk_ref[...]
  v = jnp.dot(y1_bf, wv_ref[...], preferred_element_type=jnp.float32) + bv_ref[...]

  vals = _mha(q, k, v, num_heads=num_heads, mask_fn=None)   # cross mask == 0
  cattn = jnp.dot(vals.astype(jnp.bfloat16), wo_ref[...],
                  preferred_element_type=jnp.float32) + bo_ref[...]
  cattn = cattn * (keep2_ref[0].astype(jnp.float32) * inv_keep)    # dropout2
  y2 = _layer_norm(cattn + y1_tile, ln2_ref[0:1, :], ln2_ref[1:2, :])

  # FFN per module: linear1 -> dropout -> linear2 -> ReLU
  h = jnp.dot(y2.astype(jnp.bfloat16), wf1_ref[...],
              preferred_element_type=jnp.float32) + bf1_ref[...]
  h = h * (keepf_ref[0].astype(jnp.float32) * inv_keep)            # ffn dropout
  f = jnp.dot(h.astype(jnp.bfloat16), wf2_ref[...],
              preferred_element_type=jnp.float32) + bf2_ref[...]
  f = jnp.maximum(f, 0.0)                                          # ReLU after linear2
  f = f * (keep3_ref[0].astype(jnp.float32) * inv_keep)            # dropout3
  y3 = _layer_norm(f + y2, ln3_ref[0:1, :], ln3_ref[1:2, :])
  out_ref[0] = y3.astype(out_ref.dtype)


# ------------------------------ host-side prep -------------------------------
def prepare_decoder_params(params, num_heads):
  """Split torch-layout fused QKV/KV weights into lane-dense per-role
  projections and cast matmul weights to bf16 (biases / LN params stay f32)."""
  D = params["w_qkv"].shape[0]
  H = num_heads
  hd = D // H
  bf16 = jnp.bfloat16

  w3 = params["w_qkv"].reshape(D, H, 3, hd)     # column j = h*3*hd + role*hd + d
  b3 = params["b_qkv"].reshape(H, 3, hd)
  w2 = params["w_kv"].reshape(D, H, 2, hd)
  b2 = params["b_kv"].reshape(H, 2, hd)
  return dict(
      # self-attention
      s_wq=w3[:, :, 0, :].reshape(D, D).astype(bf16),
      s_wk=w3[:, :, 1, :].reshape(D, D).astype(bf16),
      s_wv=w3[:, :, 2, :].reshape(D, D).astype(bf16),
      s_bq=b3[:, 0, :].reshape(1, D), s_bk=b3[:, 1, :].reshape(1, D),
      s_bv=b3[:, 2, :].reshape(1, D),
      s_wo=params["w_so"].astype(bf16), s_bo=params["b_so"],
      ln1=params["ln1"],
      # cross-attention
      c_wq=params["w_q"].astype(bf16), c_bq=params["b_q"],
      c_wk=w2[:, :, 0, :].reshape(D, D).astype(bf16),
      c_wv=w2[:, :, 1, :].reshape(D, D).astype(bf16),
      c_bk=b2[:, 0, :].reshape(1, D), c_bv=b2[:, 1, :].reshape(1, D),
      c_wo=params["w_co"].astype(bf16), c_bo=params["b_co"],
      ln2=params["ln2"],
      # FFN
      w_f1=params["w_f1"].astype(bf16), b_f1=params["b_f1"],
      w_f2=params["w_f2"].astype(bf16), b_f2=params["b_f2"],
      ln3=params["ln3"],
  )


def decoder_layer_pallas(x, y, kp, keep_masks, *, num_heads, dropout_p,
                         q_tile=None):
  """x, y: f32 [B,S,D]; keep_masks: 4 int8 {0,1} masks (d1,d2,df,d3)."""
  B, S, D = x.shape
  F = kp["w_f1"].shape[1]
  tq = q_tile if q_tile is not None else min(S, 256)
  assert S % tq == 0 and D % num_heads == 0
  nq = S // tq
  inv_keep = float(1.0 / (1.0 - dropout_p)) if dropout_p > 0.0 else 1.0
  k1, k2, kf, k3 = keep_masks

  per_tile_d = pl.BlockSpec((1, tq, D), lambda b, t: (b, t, 0))
  per_tile_f = pl.BlockSpec((1, tq, F), lambda b, t: (b, t, 0))
  full_seq = pl.BlockSpec((1, S, D), lambda b, t: (b, 0, 0))
  const = lambda shape: pl.BlockSpec(shape, lambda b, t: (0, 0))

  cparams = pltpu.CompilerParams(
      dimension_semantics=("parallel", "parallel"),
      vmem_limit_bytes=32 * 1024 * 1024)

  # ---- stage 1: masked self-attention + dropout1 + add&norm -> y1 ----
  y1 = pl.pallas_call(
      functools.partial(_self_attn_kernel, num_heads=num_heads, q_tile=tq,
                        inv_keep=inv_keep),
      out_shape=jax.ShapeDtypeStruct((B, S, D), jnp.float32),
      grid=(B, nq),
      in_specs=[full_seq, per_tile_d,
                const((D, D)), const((1, D)), const((D, D)), const((1, D)),
                const((D, D)), const((1, D)), const((D, D)), const((1, D)),
                const((2, D))],
      out_specs=per_tile_d,
      compiler_params=cparams,
  )(y, k1, kp["s_wq"], kp["s_bq"], kp["s_wk"], kp["s_bk"],
    kp["s_wv"], kp["s_bv"], kp["s_wo"], kp["s_bo"], kp["ln1"])

  # ---- stage 2: cross-attention + add&norm + FFN + add&norm -> y3 ----
  # Separate pallas_call because the cross-attention K/V need the full-sequence
  # y1, which only exists after every query tile of stage 1 completed.
  y3 = pl.pallas_call(
      functools.partial(_cross_ffn_kernel, num_heads=num_heads, q_tile=tq,
                        inv_keep=inv_keep),
      out_shape=jax.ShapeDtypeStruct((B, S, D), jnp.float32),
      grid=(B, nq),
      in_specs=[per_tile_d, full_seq, per_tile_d, per_tile_f, per_tile_d,
                const((D, D)), const((1, D)), const((D, D)), const((1, D)),
                const((D, D)), const((1, D)), const((D, D)), const((1, D)),
                const((2, D)),
                const((D, F)), const((1, F)), const((F, D)), const((1, D)),
                const((2, D))],
      out_specs=per_tile_d,
      compiler_params=cparams,
  )(x, y1, k2, kf, k3,
    kp["c_wq"], kp["c_bq"], kp["c_wk"], kp["c_bk"], kp["c_wv"], kp["c_bv"],
    kp["c_wo"], kp["c_bo"], kp["ln2"],
    kp["w_f1"], kp["b_f1"], kp["w_f2"], kp["b_f2"], kp["ln3"])
  return y3


# --------------------------- pure-JAX reference ------------------------------
def decoder_layer_ref(x, y, params, keep_masks, num_heads, dropout_p):
  """Mirrors the torch module math with the same bf16-operand / f32-accumulate
  matmul precision used by the kernel."""
  B, S, D = x.shape
  H = num_heads
  hd = D // H
  f32, bf16 = jnp.float32, jnp.bfloat16
  inv_keep = 1.0 / (1.0 - dropout_p) if dropout_p > 0.0 else 1.0
  d1, d2, df, d3 = [m.astype(f32) * inv_keep for m in keep_masks]

  def lin(a, w, b):
    return jnp.einsum("...i,io->...o", a.astype(bf16), w.astype(bf16),
                      preferred_element_type=f32) + b[0]

  def layer_norm(v, gb):
    mu = jnp.mean(v, -1, keepdims=True)
    var = jnp.mean((v - mu) ** 2, -1, keepdims=True)
    return (v - mu) / jnp.sqrt(var + 1e-5) * gb[0] + gb[1]

  def attention(q, k, v, mask):
    s = jnp.einsum("bhqd,bhkd->bhqk", q.astype(bf16), k.astype(bf16),
                   preferred_element_type=f32) / math.sqrt(hd)
    if mask is not None:
      s = s + mask[:, None]
    a = jax.nn.softmax(s, axis=-1)
    return jnp.einsum("bhqk,bhkd->bhqd", a.astype(bf16), v.astype(bf16),
                      preferred_element_type=f32)

  # 1) masked self-attention on y
  qkv = lin(y, params["w_qkv"], params["b_qkv"]).reshape(B, S, H, 3 * hd)
  q, k, v = jnp.split(qkv.transpose(0, 2, 1, 3), 3, axis=-1)
  causal = jnp.where(jnp.tril(jnp.ones((S, S), bool)), 0.0, -1e9).astype(f32)
  vals = attention(q, k, v, jnp.broadcast_to(causal, (B, S, S)))
  vals = vals.transpose(0, 2, 1, 3).reshape(B, S, D)
  attn = lin(vals, params["w_so"], params["b_so"])
  y1 = layer_norm(attn * d1 + y, params["ln1"])

  # 2) cross-attention: q from x, kv from y1 (no mask)
  q = lin(x, params["w_q"], params["b_q"]).reshape(B, S, H, hd).transpose(0, 2, 1, 3)
  kv = lin(y1, params["w_kv"], params["b_kv"]).reshape(B, S, H, 2 * hd)
  k, v = jnp.split(kv.transpose(0, 2, 1, 3), 2, axis=-1)
  vals = attention(q, k, v, None)
  vals = vals.transpose(0, 2, 1, 3).reshape(B, S, D)
  cattn = lin(vals, params["w_co"], params["b_co"])
  y2 = layer_norm(cattn * d2 + y1, params["ln2"])

  # 3) FFN: linear1 -> dropout -> linear2 -> relu, then dropout3 + add&norm
  h = lin(y2, params["w_f1"], params["b_f1"]) * df
  f = jnp.maximum(lin(h, params["w_f2"], params["b_f2"]), 0.0)
  y3 = layer_norm(f * d3 + y2, params["ln3"])
  return y3


# ------------------------------------ main -----------------------------------
if __name__ == "__main__":
  B, S, D, H, F = 2, 64, 32, 4, 64      # batch, seq, d_model, heads, ffn_hidden
  TQ = 32                                # query tile (multiple of 32)
  dropout_p = 0.1

  key = jax.random.PRNGKey(0)
  ks = jax.random.split(key, 24)

  x = jax.random.normal(ks[0], (B, S, D), jnp.float32)   # encoder output
  y = jax.random.normal(ks[1], (B, S, D), jnp.float32)   # decoder stream

  def w(k, shape):
    return jax.random.normal(k, shape, jnp.float32) * 0.1

  ones_d = jnp.ones(D, jnp.float32)
  zeros_d = jnp.zeros(D, jnp.float32)
  params = {
      "w_qkv": w(ks[2], (D, 3 * D)), "b_qkv": w(ks[3], (1, 3 * D)),
      "w_so": w(ks[4], (D, D)),      "b_so": w(ks[5], (1, D)),
      "w_q": w(ks[6], (D, D)),       "b_q": w(ks[7], (1, D)),
      "w_kv": w(ks[8], (D, 2 * D)),  "b_kv": w(ks[9], (1, 2 * D)),
      "w_co": w(ks[10], (D, D)),     "b_co": w(ks[11], (1, D)),
      "w_f1": w(ks[12], (D, F)),     "b_f1": w(ks[13], (1, F)),
      "w_f2": w(ks[14], (F, D)),     "b_f2": w(ks[15], (1, D)),
      # fresh torch LayerNorm defaults: gamma=1, beta=0
      "ln1": jnp.stack([ones_d, zeros_d]),
      "ln2": jnp.stack([ones_d, zeros_d]),
      "ln3": jnp.stack([ones_d, zeros_d]),
  }
  kp = prepare_decoder_params(params, H)

  # ---- correctness check with dropout disabled (deterministic path) ----
  ones_masks = (jnp.ones((B, S, D), jnp.int8), jnp.ones((B, S, D), jnp.int8),
                jnp.ones((B, S, F), jnp.int8), jnp.ones((B, S, D), jnp.int8))
  out_nodrop = decoder_layer_pallas(x, y, kp, ones_masks, num_heads=H,
                                    dropout_p=0.0, q_tile=TQ)
  ref = decoder_layer_ref(x, y, params, ones_masks, H, 0.0)
  np.testing.assert_allclose(np.asarray(out_nodrop), np.asarray(ref),
                             rtol=2e-2, atol=2e-2)

  # ---- full forward with training-mode dropout (compact int8 keep-masks) ----
  def keep_mask(k, shape, p):
    return jax.random.bernoulli(k, 1.0 - p, shape).astype(jnp.int8)

  drop_masks = (keep_mask(ks[16], (B, S, D), dropout_p),
                keep_mask(ks[17], (B, S, D), dropout_p),
                keep_mask(ks[18], (B, S, F), dropout_p),
                keep_mask(ks[19], (B, S, D), dropout_p))
  out = decoder_layer_pallas(x, y, kp, drop_masks, num_heads=H,
                             dropout_p=dropout_p, q_tile=TQ)
  jax.block_until_ready(out)
  assert out.shape == (B, S, D)
  assert bool(jnp.all(jnp.isfinite(out)))
  print("KERNEL_OK")
</pallas_src>

<mosaic_0001>
module attributes {stable_mosaic.version = 11 : i64} {
  func.func @_self_attn_kernel(%arg0: i32, %arg1: i32, %arg2: memref<1x64x32xf32, #tpu.memory_space<vmem>>, %arg3: memref<1x32x32xi8, #tpu.memory_space<vmem>>, %arg4: memref<32x32xbf16, #tpu.memory_space<vmem>>, %arg5: memref<1x32xf32, #tpu.memory_space<vmem>>, %arg6: memref<32x32xbf16, #tpu.memory_space<vmem>>, %arg7: memref<1x32xf32, #tpu.memory_space<vmem>>, %arg8: memref<32x32xbf16, #tpu.memory_space<vmem>>, %arg9: memref<1x32xf32, #tpu.memory_space<vmem>>, %arg10: memref<32x32xbf16, #tpu.memory_space<vmem>>, %arg11: memref<1x32xf32, #tpu.memory_space<vmem>>, %arg12: memref<2x32xf32, #tpu.memory_space<vmem>>, %arg13: memref<1x32x32xf32, #tpu.memory_space<vmem>>) attributes {dimension_semantics = [#tpu.dimension_semantics<parallel>, #tpu.dimension_semantics<parallel>], iteration_bounds = array<i64: 2, 2>, scalar_prefetch = 0 : i64, scratch_operands = 0 : i64, tpu.core_type = #tpu.core_type<tc>, window_params = [{transform_indices = @transform_0, window_bounds = array<i64: 1, 64, 32>}, {transform_indices = @transform_1, window_bounds = array<i64: 1, 32, 32>}, {pipeline_mode = #tpu.pipeline_mode<synchronous>, transform_indices = @transform_2, window_bounds = array<i64: 32, 32>}, {pipeline_mode = #tpu.pipeline_mode<synchronous>, transform_indices = @transform_3, window_bounds = array<i64: 1, 32>}, {pipeline_mode = #tpu.pipeline_mode<synchronous>, transform_indices = @transform_4, window_bounds = array<i64: 32, 32>}, {pipeline_mode = #tpu.pipeline_mode<synchronous>, transform_indices = @transform_5, window_bounds = array<i64: 1, 32>}, {pipeline_mode = #tpu.pipeline_mode<synchronous>, transform_indices = @transform_6, window_bounds = array<i64: 32, 32>}, {pipeline_mode = #tpu.pipeline_mode<synchronous>, transform_indices = @transform_7, window_bounds = array<i64: 1, 32>}, {pipeline_mode = #tpu.pipeline_mode<synchronous>, transform_indices = @transform_8, window_bounds = array<i64: 32, 32>}, {pipeline_mode = #tpu.pipeline_mode<synchronous>, transform_indices = @transform_9, window_bounds = array<i64: 1, 32>}, {pipeline_mode = #tpu.pipeline_mode<synchronous>, transform_indices = @transform_10, window_bounds = array<i64: 2, 32>}, {transform_indices = @transform_11, window_bounds = array<i64: 1, 32, 32>}]} {
    %c32_i32 = arith.constant 32 : i32
    %0 = arith.muli %arg1, %c32_i32 : i32
    %1 = tpu.assume_multiple %0, 32 : i32
    %c0 = arith.constant 0 : index
    %c0_0 = arith.constant 0 : index
    %c0_1 = arith.constant 0 : index
    %2 = vector.load %arg2[%c0, %c0_0, %c0_1] : memref<1x64x32xf32, #tpu.memory_space<vmem>>, vector<1x64x32xf32>
    %3 = vector.shape_cast %2 : vector<1x64x32xf32> to vector<64x32xf32>
    %c0_2 = arith.constant 0 : index
    %4 = arith.index_cast %1 : i32 to index
    %c0_3 = arith.constant 0 : index
    %5 = vector.load %arg2[%c0_2, %4, %c0_3] : memref<1x64x32xf32, #tpu.memory_space<vmem>>, vector<1x32x32xf32>
    %6 = vector.shape_cast %5 : vector<1x32x32xf32> to vector<32x32xf32>
    %7 = arith.truncf %3 : vector<64x32xf32> to vector<64x32xbf16>
    %8 = arith.truncf %6 : vector<32x32xf32> to vector<32x32xbf16>
    %c0_4 = arith.constant 0 : index
    %c0_5 = arith.constant 0 : index
    %9 = vector.load %arg4[%c0_4, %c0_5] : memref<32x32xbf16, #tpu.memory_space<vmem>>, vector<32x32xbf16>
    %cst = arith.constant dense<0.000000e+00> : vector<32x32xf32>
    %10 = tpu.matmul %8, %9, %cst {dimension_numbers = #tpu.dot_dimension_numbers<[1], [0], [0], [1], [0, 0, 1, 1], [], []>} : vector<32x32xbf16>, vector<32x32xbf16>, vector<32x32xf32> -> vector<32x32xf32>
    %c0_6 = arith.constant 0 : index
    %c0_7 = arith.constant 0 : index
    %11 = vector.load %arg5[%c0_6, %c0_7] : memref<1x32xf32, #tpu.memory_space<vmem>>, vector<1x32xf32>
    %12 = vector.broadcast %11 : vector<1x32xf32> to vector<32x32xf32>
    %13 = arith.addf %10, %12 : vector<32x32xf32>
    %c0_8 = arith.constant 0 : index
    %c0_9 = arith.constant 0 : index
    %14 = vector.load %arg6[%c0_8, %c0_9] : memref<32x32xbf16, #tpu.memory_space<vmem>>, vector<32x32xbf16>
    %cst_10 = arith.constant dense<0.000000e+00> : vector<64x32xf32>
    %15 = tpu.matmul %7, %14, %cst_10 {dimension_numbers = #tpu.dot_dimension_numbers<[1], [0], [0], [1], [0, 0, 1, 1], [], []>} : vector<64x32xbf16>, vector<32x32xbf16>, vector<64x32xf32> -> vector<64x32xf32>
    %c0_11 = arith.constant 0 : index
    %c0_12 = arith.constant 0 : index
    %16 = vector.load %arg7[%c0_11, %c0_12] : memref<1x32xf32, #tpu.memory_space<vmem>>, vector<1x32xf32>
    %17 = vector.broadcast %16 : vector<1x32xf32> to vector<64x32xf32>
    %18 = arith.addf %15, %17 : vector<64x32xf32>
    %c0_13 = arith.constant 0 : index
    %c0_14 = arith.constant 0 : index
    %19 = vector.load %arg8[%c0_13, %c0_14] : memref<32x32xbf16, #tpu.memory_space<vmem>>, vector<32x32xbf16>
    %cst_15 = arith.constant dense<0.000000e+00> : vector<64x32xf32>
    %20 = tpu.matmul %7, %19, %cst_15 {dimension_numbers = #tpu.dot_dimension_numbers<[1], [0], [0], [1], [0, 0, 1, 1], [], []>} : vector<64x32xbf16>, vector<32x32xbf16>, vector<64x32xf32> -> vector<64x32xf32>
    %c0_16 = arith.constant 0 : index
    %c0_17 = arith.constant 0 : index
    %21 = vector.load %arg9[%c0_16, %c0_17] : memref<1x32xf32, #tpu.memory_space<vmem>>, vector<1x32xf32>
    %22 = vector.broadcast %21 : vector<1x32xf32> to vector<64x32xf32>
    %23 = arith.addf %20, %22 : vector<64x32xf32>
    %24 = arith.truncf %13 : vector<32x32xf32> to vector<32x32xbf16>
    %25 = vector.shape_cast %24 : vector<32x32xbf16> to vector<32x4x8xbf16>
    %26 = tpu.transpose %25, [1, 0, 2] : vector<32x4x8xbf16> -> vector<4x32x8xbf16>
    %27 = arith.truncf %18 : vector<64x32xf32> to vector<64x32xbf16>
    %28 = vector.shape_cast %27 : vector<64x32xbf16> to vector<64x4x8xbf16>
    %29 = tpu.transpose %28, [1, 0, 2] : vector<64x4x8xbf16> -> vector<4x64x8xbf16>
    %30 = arith.truncf %23 : vector<64x32xf32> to vector<64x32xbf16>
    %31 = vector.shape_cast %30 : vector<64x32xbf16> to vector<64x4x8xbf16>
    %32 = tpu.transpose %31, [1, 0, 2] : vector<64x4x8xbf16> -> vector<4x64x8xbf16>
    "tpu.trace_start"() <{level = 10 : i32, message = "hqd,hkd->hqk"}> : () -> ()
    %cst_18 = arith.constant dense<0.000000e+00> : vector<4x32x64xf32>
    %33 = tpu.matmul %26, %29, %cst_18 {dimension_numbers = #tpu.dot_dimension_numbers<[2], [2], [1], [1], [0, 0, 0, 1, 1, 1], [0], [0]>} : vector<4x32x8xbf16>, vector<4x64x8xbf16>, vector<4x32x64xf32> -> vector<4x32x64xf32>
    "tpu.trace_stop"() : () -> ()
    %cst_19 = arith.constant 0.353553385 : f32
    %34 = vector.broadcast %cst_19 : f32 to vector<4x32x64xf32>
    %35 = arith.mulf %33, %34 : vector<4x32x64xf32>
    %36 = tpu.iota {dimensions = array<i32: 1>} : vector<4x32x64xi32>
    %37 = vector.broadcast %1 : i32 to vector<4x32x64xi32>
    %38 = arith.addi %37, %36 : vector<4x32x64xi32>
    %39 = tpu.iota {dimensions = array<i32: 2>} : vector<4x32x64xi32>
    %40 = arith.cmpi sle, %39, %38 : vector<4x32x64xi32>
    %cst_20 = arith.constant -1.000000e+09 : f32
    %41 = vector.broadcast %cst_20 : f32 to vector<4x32x64xf32>
    %42 = arith.select %40, %35, %41 : vector<4x32x64xi1>, vector<4x32x64xf32>
    %cst_21 = arith.constant dense<0xFF800000> : vector<4x32xf32>
    %43 = vector.multi_reduction <maximumf>, %42, %cst_21 [2] : vector<4x32x64xf32> to vector<4x32xf32>
    %44 = vector.shape_cast %43 : vector<4x32xf32> to vector<4x32x1xf32>
    %45 = vector.broadcast %44 : vector<4x32x1xf32> to vector<4x32x64xf32>
    %46 = arith.subf %42, %45 : vector<4x32x64xf32>
    %47 = math.exp %46 : vector<4x32x64xf32>
    %cst_22 = arith.constant dense<0.000000e+00> : vector<4x32xf32>
    %48 = vector.multi_reduction <add>, %47, %cst_22 [2] : vector<4x32x64xf32> to vector<4x32xf32>
    %49 = vector.shape_cast %48 : vector<4x32xf32> to vector<4x32x1xf32>
    %50 = tpu.reciprocal %49 {approx = true} : vector<4x32x1xf32> -> vector<4x32x1xf32>
    %51 = vector.broadcast %50 : vector<4x32x1xf32> to vector<4x32x64xf32>
    %52 = arith.mulf %47, %51 : vector<4x32x64xf32>
    %53 = arith.truncf %52 : vector<4x32x64xf32> to vector<4x32x64xbf16>
    "tpu.trace_start"() <{level = 10 : i32, message = "hqk,hkd->hqd"}> : () -> ()
    %cst_23 = arith.constant dense<0.000000e+00> : vector<4x32x8xf32>
    %54 = tpu.matmul %53, %32, %cst_23 {dimension_numbers = #tpu.dot_dimension_numbers<[2], [1], [1], [2], [0, 0, 0, 1, 1, 2], [0], [0]>} : vector<4x32x64xbf16>, vector<4x64x8xbf16>, vector<4x32x8xf32> -> vector<4x32x8xf32>
    "tpu.trace_stop"() : () -> ()
    %55 = tpu.transpose %54, [1, 0, 2] : vector<4x32x8xf32> -> vector<32x4x8xf32>
    %56 = vector.shape_cast %55 : vector<32x4x8xf32> to vector<32x32xf32>
    %57 = arith.truncf %56 : vector<32x32xf32> to vector<32x32xbf16>
    %c0_24 = arith.constant 0 : index
    %c0_25 = arith.constant 0 : index
    %58 = vector.load %arg10[%c0_24, %c0_25] : memref<32x32xbf16, #tpu.memory_space<vmem>>, vector<32x32xbf16>
    %cst_26 = arith.constant dense<0.000000e+00> : vector<32x32xf32>
    %59 = tpu.matmul %57, %58, %cst_26 {dimension_numbers = #tpu.dot_dimension_numbers<[1], [0], [0], [1], [0, 0, 1, 1], [], []>} : vector<32x32xbf16>, vector<32x32xbf16>, vector<32x32xf32> -> vector<32x32xf32>
    %c0_27 = arith.constant 0 : index
    %c0_28 = arith.constant 0 : index
    %60 = vector.load %arg11[%c0_27, %c0_28] : memref<1x32xf32, #tpu.memory_space<vmem>>, vector<1x32xf32>
    %61 = vector.broadcast %60 : vector<1x32xf32> to vector<32x32xf32>
    %62 = arith.addf %59, %61 : vector<32x32xf32>
    %c0_29 = arith.constant 0 : index
    %c0_30 = arith.constant 0 : index
    %c0_31 = arith.constant 0 : index
    %63 = vector.load %arg3[%c0_29, %c0_30, %c0_31] : memref<1x32x32xi8, #tpu.memory_space<vmem>>, vector<1x32x32xi8>
    %64 = vector.shape_cast %63 : vector<1x32x32xi8> to vector<32x32xi8>
    %65 = arith.sitofp %64 : vector<32x32xi8> to vector<32x32xf32>
    %cst_32 = arith.constant 1.000000e+00 : f32
    %66 = vector.broadcast %cst_32 : f32 to vector<32x32xf32>
    %67 = arith.mulf %65, %66 : vector<32x32xf32>
    %68 = arith.mulf %62, %67 : vector<32x32xf32>
    %69 = arith.addf %68, %6 : vector<32x32xf32>
    %c0_33 = arith.constant 0 : index
    %c0_34 = arith.constant 0 : index
    %70 = vector.load %arg12[%c0_33, %c0_34] : memref<2x32xf32, #tpu.memory_space<vmem>>, vector<1x32xf32>
    %c1 = arith.constant 1 : index
    %c0_35 = arith.constant 0 : index
    %71 = vector.load %arg12[%c1, %c0_35] : memref<2x32xf32, #tpu.memory_space<vmem>>, vector<1x32xf32>
    %cst_36 = arith.constant dense<0.000000e+00> : vector<32xf32>
    %72 = vector.multi_reduction <add>, %69, %cst_36 [1] : vector<32x32xf32> to vector<32xf32>
    %73 = vector.shape_cast %72 : vector<32xf32> to vector<32x1xf32>
    %cst_37 = arith.constant 3.200000e+01 : f32
    %74 = vector.broadcast %cst_37 : f32 to vector<32x1xf32>
    %75 = arith.divf %73, %74 : vector<32x1xf32>
    %76 = vector.broadcast %75 : vector<32x1xf32> to vector<32x32xf32>
    %77 = arith.subf %69, %76 : vector<32x32xf32>
    %78 = vector.broadcast %75 : vector<32x1xf32> to vector<32x32xf32>
    %79 = arith.subf %69, %78 : vector<32x32xf32>
    %80 = arith.mulf %77, %79 : vector<32x32xf32>
    %cst_38 = arith.constant dense<0.000000e+00> : vector<32xf32>
    %81 = vector.multi_reduction <add>, %80, %cst_38 [1] : vector<32x32xf32> to vector<32xf32>
    %82 = vector.shape_cast %81 : vector<32xf32> to vector<32x1xf32>
    %cst_39 = arith.constant 3.200000e+01 : f32
    %83 = vector.broadcast %cst_39 : f32 to vector<32x1xf32>
    %84 = arith.divf %82, %83 : vector<32x1xf32>
    %85 = vector.broadcast %75 : vector<32x1xf32> to vector<32x32xf32>
    %86 = arith.subf %69, %85 : vector<32x32xf32>
    %cst_40 = arith.constant 9.99999974E-6 : f32
    %87 = vector.broadcast %cst_40 : f32 to vector<32x1xf32>
    %88 = arith.addf %84, %87 : vector<32x1xf32>
    %89 = math.rsqrt %88 : vector<32x1xf32>
    %90 = vector.broadcast %89 : vector<32x1xf32> to vector<32x32xf32>
    %91 = arith.mulf %86, %90 : vector<32x32xf32>
    %92 = vector.broadcast %70 : vector<1x32xf32> to vector<32x32xf32>
    %93 = arith.mulf %91, %92 : vector<32x32xf32>
    %94 = vector.broadcast %71 : vector<1x32xf32> to vector<32x32xf32>
    %95 = arith.addf %93, %94 : vector<32x32xf32>
    %c0_41 = arith.constant 0 : index
    %c0_42 = arith.constant 0 : index
    %c0_43 = arith.constant 0 : index
    %96 = vector.load %arg13[%c0_41, %c0_42, %c0_43] : memref<1x32x32xf32, #tpu.memory_space<vmem>>, vector<1x32x32xf32>
    %97 = vector.shape_cast %96 : vector<1x32x32xf32> to vector<32x32xf32>
    %98 = vector.shape_cast %95 : vector<32x32xf32> to vector<1x32x32xf32>
    tpu.vector_store %arg13[%c0_41, %c0_42, %c0_43], %98 {strides = array<i32>} : memref<1x32x32xf32, #tpu.memory_space<vmem>>, vector<1x32x32xf32>,
    return
  }
  func.func @transform_0(%arg0: i32, %arg1: i32) -> (i32, i32, i32) {
    %c0_i32 = arith.constant 0 : i32
    %c0_i32_0 = arith.constant 0 : i32
    %c0_i32_1 = arith.constant 0 : i32
    return %arg0, %c0_i32, %c0_i32_0 : i32, i32, i32
  }
  func.func @transform_1(%arg0: i32, %arg1: i32) -> (i32, i32, i32) {
    %c0_i32 = arith.constant 0 : i32
    %c0_i32_0 = arith.constant 0 : i32
    return %arg0, %arg1, %c0_i32 : i32, i32, i32
  }
  func.func @transform_2(%arg0: i32, %arg1: i32) -> (i32, i32) {
    %c0_i32 = arith.constant 0 : i32
    %c0_i32_0 = arith.constant 0 : i32
    %c0_i32_1 = arith.constant 0 : i32
    return %c0_i32, %c0_i32_0 : i32, i32
  }
  func.func @transform_3(%arg0: i32, %arg1: i32) -> (i32, i32) {
    %c0_i32 = arith.constant 0 : i32
    %c0_i32_0 = arith.constant 0 : i32
    %c0_i32_1 = arith.constant 0 : i32
    return %c0_i32, %c0_i32_0 : i32, i32
  }
  func.func @transform_4(%arg0: i32, %arg1: i32) -> (i32, i32) {
    %c0_i32 = arith.constant 0 : i32
    %c0_i32_0 = arith.constant 0 : i32
    %c0_i32_1 = arith.constant 0 : i32
    return %c0_i32, %c0_i32_0 : i32, i32
  }
  func.func @transform_5(%arg0: i32, %arg1: i32) -> (i32, i32) {
    %c0_i32 = arith.constant 0 : i32
    %c0_i32_0 = arith.constant 0 : i32
    %c0_i32_1 = arith.constant 0 : i32
    return %c0_i32, %c0_i32_0 : i32, i32
  }
  func.func @transform_6(%arg0: i32, %arg1: i32) -> (i32, i32) {
    %c0_i32 = arith.constant 0 : i32
    %c0_i32_0 = arith.constant 0 : i32
    %c0_i32_1 = arith.constant 0 : i32
    return %c0_i32, %c0_i32_0 : i32, i32
  }
  func.func @transform_7(%arg0: i32, %arg1: i32) -> (i32, i32) {
    %c0_i32 = arith.constant 0 : i32
    %c0_i32_0 = arith.constant 0 : i32
    %c0_i32_1 = arith.constant 0 : i32
    return %c0_i32, %c0_i32_0 : i32, i32
  }
  func.func @transform_8(%arg0: i32, %arg1: i32) -> (i32, i32) {
    %c0_i32 = arith.constant 0 : i32
    %c0_i32_0 = arith.constant 0 : i32
    %c0_i32_1 = arith.constant 0 : i32
    return %c0_i32, %c0_i32_0 : i32, i32
  }
  func.func @transform_9(%arg0: i32, %arg1: i32) -> (i32, i32) {
    %c0_i32 = arith.constant 0 : i32
    %c0_i32_0 = arith.constant 0 : i32
    %c0_i32_1 = arith.constant 0 : i32
    return %c0_i32, %c0_i32_0 : i32, i32
  }
  func.func @transform_10(%arg0: i32, %arg1: i32) -> (i32, i32) {
    %c0_i32 = arith.constant 0 : i32
    %c0_i32_0 = arith.constant 0 : i32
    %c0_i32_1 = arith.constant 0 : i32
    return %c0_i32, %c0_i32_0 : i32, i32
  }
  func.func @transform_11(%arg0: i32, %arg1: i32) -> (i32, i32, i32) {
    %c0_i32 = arith.constant 0 : i32
    %c0_i32_0 = arith.constant 0 : i32
    return %arg0, %arg1, %c0_i32 : i32, i32, i32
  }
}

</mosaic_0001>

<bundles_post_ra>
// kernel: tpu_custom_call.1
= control target key start
LH: loop header
LB: loop body
LE: loop exit
PB: predicated region body
PF: predicated region fallthrough
CT: control target
= control target key end

     0   :  { %s5633_s17 = smov 0   ;;  %s5635_s18 = smov 0   ;;  %s6970_s0 = inlined_call_operand.vmem [shape: f32[2,64,32], index: 0, kind: input, shape index: {}]   ;;  %s6971_s1 = inlined_call_operand.vmem [shape: s8[2,64,32], index: 1, kind: input, shape index: {}]   ;;  %s6972_s2 = inlined_call_operand.vmem [shape: bf16[32,32], index: 2, kind: input, shape index: {}]   ;;  %s6973_s3 = inlined_call_operand.vmem [shape: f32[1,32], index: 3, kind: input, shape index: {}]   ;;  %s6974_s4 = inlined_call_operand.vmem [shape: bf16[32,32], index: 4, kind: input, shape index: {}]   ;;  %s6975_s5 = inlined_call_operand.vmem [shape: f32[1,32], index: 5, kind: input, shape index: {}]   ;;  %s6976_s6 = inlined_call_operand.vmem [shape: bf16[32,32], index: 6, kind: input, shape index: {}]   ;;  %s6977_s7 = inlined_call_operand.vmem [shape: f32[1,32], index: 7, kind: input, shape index: {}]   ;;  %s6978_s8 = inlined_call_operand.vmem [shape: bf16[32,32], index: 8, kind: input, shape index: {}]   ;;  %s6979_s9 = inlined_call_operand.vmem [shape: f32[1,32], index: 9, kind: input, shape index: {}]   ;;  %s6980_s10 = inlined_call_operand.vmem [shape: f32[2,32], index: 10, kind: input, shape index: {}]   ;;  %s6981_s11 = inlined_call_operand.vmem [shape: f32[2,64,32], index: 11, kind: output, shape index: {}]  }
   0x1   :  { %s5637_s19 = smov 0   ;;  %s5639_s20 = smov 0  }
   0x2   :  { %s5641_s21 = smov 0  }
   0x3 LB: > { %s30_s22 = sadd.s32 1, %s5554_s19  ;;  %s33_s23 = sadd.s32 1, %s5558_s20  ;;  %s5562_s21 = sphi %s5641_s21, %s21_s21   ;;  %s5558_s20 = sphi %s5639_s20, %s6999_s20   ;;  %s5554_s19 = sphi %s5637_s19, %s6998_s19   ;;  %s5550_s18 = sphi %s5635_s18, %s6997_s18   ;;  %s5546_s17 = sphi %s5633_s17, %s6996_s17  }
   0x4   : > { %p31_p0 = scmp.ge.s32.totalorder %s30_s22, 2  ;;  %p5039_p1 = scmp.ge.s32.totalorder %s5562_s21, 1 }
   0x5   : > { %p366_p2 = scmp.lt.s32.totalorder %s5562_s21, 5 }
   0x6   : > { %s7001_s22 = smov (%p31_p0, %s30_s22), 0  ;;  %s7003_s23 = smov (!%p31_p0, %s33_s23), %s5558_s20 }
   0x7   : > { %p367_p3 = pnand %p5039_p1, %p366_p2  ;;  %p35_p4 = scmp.ge.s32.totalorder %s7003_s23, 2 }
   0x9   : > { %s7005_s23 = smov (%p35_p4, %s7003_s23), 0  ;;  %370 = sbr.rel (%p367_p3) target bundleno = 2024 (0x7e8), region = 64 }
  0x10   : > { %v5440_v0 = vld [vmem:[%s6974_s4] sm:$0xff]   ;;  %p418_p5 = scmp.lt.s32.totalorder %s5550_s18, 1  ;;  %v5441_v1 = vld [vmem:[%s6974_s4 + $0x8] sm:$0xff]   ;;  %s5047_s13 = sshll.u32 %s5546_s17, 5  ;;  %vm485_vm0 = vcmask 261120   ;;  %v6982_v58 = vlaneseq  ;;  %vm3431_vm1 = vcmask 64512  }
  0x11   : > { %5217 = vmatprep.subr.bf16.mxu1 %v5440_v0  ;;  %v5442_v2 = vld [vmem:[%s6972_s2] sm:$0xff]   ;;  %v5443_v3 = vld [vmem:[%s6972_s2 + $0x8] sm:$0xff]   ;;  %s5564_s16 = smov 104   ;;  %s5566_s26 = smov 112   ;;  %v5567_v56 = vmov 1983009808  }
  0x12   : > { %s7007_s18 = smov (!%p418_p5, %s5550_s18), 1  ;;  %5218 = vmatpush3.bf16.msra.mxu1 %v5440_v0  ;;  %5209 = vmatprep.subr.bf16.mxu0 %v5442_v2  ;;  %v5444_v22 = vld [vmem:[%s6976_s6] sm:$0xff]   ;;  %v5445_v23 = vld [vmem:[%s6976_s6 + $0x8] sm:$0xff]   ;;  %v785_v57 = vunpack.c.l.s4 %v5567_v56  ;;  %v5568_v59 = vmov 1934713408   ;;  %v5758_v63 = vshrl.u32 %v6982_v58, 7 }
  0x13   : > { %5219 = vmatprep.subr.bf16.mxu1 %v5441_v1  ;;  %s5140_s14 = sshll.u32 %s7007_s18, 6  ;;  %5210 = vmatpush3.bf16.msra.mxu0 %v5442_v2  ;;  %v5053_v25 = vld [vmem:[%s6975_s5] ss:$0 sm:$0xff]  ;;  %v816_v60 = vunpack.c.l.s4 %v5568_v59  ;;  %vm3748_vm3 = vcmask 523264   ;;  %s5571_s29 = smov 8   ;;  %vm4749_vm7 = vcmask 130048  }
  0x14   : > { %s422_s24 = scalar_lea.vmem %s6970_s0, %s5140_s14  ;;  %5211 = vmatprep.subr.bf16.mxu0 %v5443_v3  ;;  %v5048_v28 = vld [vmem:[%s6973_s3] ss:$0 sm:$0xff]  ;;  %v786_v62 = vunpack.c.0.s8 %v785_v57  ;;  %6985 = vst [vmem:[#allocation2_spill] sm:$0xff] %v5758_v63  ;;  %s5572_s14 = smov 24   ;;  %vm4754_vm8 = vcmask 195584  }
  0x15   : > { %v443_v4 = vld [vmem:[%s422_s24] sm:$0xff]  ;;  %v444_v5 = vld [vmem:[%s422_s24 + $0x8] sm:$0xff]  ;;  %v445_v6 = vld [vmem:[%s422_s24 + $0x10] sm:$0xff]  ;;  %s5686_s25 = scalar_lea.vmem %s422_s24, %s5047_s13  ;;  %p425_p6 = scmp.lt.s32.totalorder %s5546_s17, 1 }
  0x16   : > { %5220 = vmatpush3.bf16.msra.mxu1 %v5441_v1  ;;  %v456_v7 = vpack.c.bf16 %v444_v5, %v443_v4  ;;  %v446_v8 = vld [vmem:[%s422_s24 + $0x18] sm:$0xff]  ;;  %v447_v9 = vld [vmem:[%s422_s24 + $0x20] sm:$0xff]  ;;  %v448_v10 = vld [vmem:[%s422_s24 + $0x28] sm:$0xff]  ;;  %v5569_v1 = vmov 0   ;;  %s5045_s15 = sshll.u32 %s7007_s18, 3 }
  0x17   : > { %v457_v11 = vpack.c.bf16 %v446_v8, %v445_v6  ;;  %v458_v12 = vpack.c.bf16 %v448_v10, %v447_v9  ;;  %v452_v13 = vld [vmem:[%s5686_s25] sm:$0xff]  ;;  %5212 = vmatpush3.bf16.msra.mxu0 %v5443_v3  ;;  %v453_v14 = vld [vmem:[%s5686_s25 + $0x8] sm:$0xff]  ;;  %v454_v15 = vld [vmem:[%s5686_s25 + $0x10] sm:$0xff]  ;;  %v5760_v2 = vpack.i.b16 %v5569_v1, %v5569_v1  ;;  %v817_v6 = vunpack.c.0.s8 %v816_v60 }
  0x18   : > { %5221 = vmatprep.mubr.msk.bf16.mxu1 %vm485_vm0, %v456_v7  ;;  %v455_v16 = vld [vmem:[%s5686_s25 + $0x18] sm:$0xff]  ;;  %v460_v17 = vpack.c.bf16 %v453_v14, %v452_v13  ;;  %v449_v19 = vld [vmem:[%s422_s24 + $0x30] sm:$0xff]  ;;  %5229 = vmatprep.subr.bf16.mxu0 %v5444_v22 }
  0x19   : > { %5222 = vmatmul.mubr.msk.bf16.vlgmr.msra.gmra.mrb[0].mxu1 %vm485_vm0, %v457_v11  ;;  %v461_v18 = vpack.c.bf16 %v455_v16, %v454_v15  ;;  %v450_v20 = vld [vmem:[%s422_s24 + $0x38] sm:$0xff]  ;;  %s5565_s24 = smov 120  }
  0x1a   : > { %5225 = vmatprep.mubr.msk.bf16.mxu1 %vm485_vm0, %v458_v12  ;;  %5213 = vmatprep.mubr.msk.bf16.mxu0 %vm485_vm0, %v460_v17  ;;  %v459_v21 = vpack.c.bf16 %v450_v20, %v449_v19  ;;  %v5768_v17 = vsub.s32 %v817_v6, %v5758_v63 }
  0x1b   : > { %5214 = vmatmul.mubr.msk.bf16.vlgmr.msra.gmra.mrb[0].mxu0 %vm485_vm0, %v461_v18 }
  0x1c   : > { %5233 = vmatprep.mubr.msk.bf16.mxu0 %vm485_vm0, %v456_v7  ;;  %5230 = vmatpush3.bf16.msra.mxu0 %v5444_v22  ;;  %v5763_v7 = vsub.s32 %v786_v62, %v5758_v63 }
  0x1d   : > { %5231 = vmatprep.subr.bf16.mxu0 %v5445_v23 }
  0x20   : > { %5232 = vmatpush3.bf16.msra.mxu0 %v5445_v23 }
  0x21   : > { %5226 = vmatmul.mubr.msk.bf16.gmra.mrb[4].mxu1 %vm485_vm0, %v459_v21 }
  0x23   : > { %5234 = vmatmul.mubr.msk.bf16.vlgmr.msra.gmra.mrb[4].mxu0 %vm485_vm0, %v457_v11 }
  0x24   : > { %5237 = vmatprep.mubr.msk.bf16.mxu0 %vm485_vm0, %v458_v12 }
  0x2b   : > { %5238 = vmatmul.mubr.msk.bf16.gmra.mrb[8].mxu0 %vm485_vm0, %v459_v21 }
  0xec   : > { %v5223_v24 = vpop.f32.mrb[0].mxu1 }
  0xed   : > { %v610_v26 = vpop.f32.mrb[1].mxu1  ;;  %v619_v29 = vadd.f32 %v5223_v24, %v5053_v25 }
  0xee   : > { %v5224_v27 = vpop.f32.mrb[2].mxu1  ;;  %v5215_v32 = vpop.f32.mrb[0].mxu0  ;;  %v611_v33 = vadd.f32 %v5053_v25, %v610_v26 }
  0xef   : > { %v622_v30 = vadd.f32 %v5224_v27, %v5053_v25  ;;  %v613_v31 = vpop.f32.mrb[3].mxu1  ;;  %v535_v35 = vadd.f32 %v5215_v32, %v5048_v28  ;;  %v526_v36 = vpop.f32.mrb[1].mxu0 }
  0xf0   : > { %v614_v34 = vadd.f32 %v5053_v25, %v613_v31  ;;  %v527_v38 = vadd.f32 %v5048_v28, %v526_v36  ;;  %v5216_v39 = vpop.f32.mrb[2].mxu0 }
  0xf1   : > { %v5714_v37 = vpack.c.bf16 %v622_v30, %v619_v29  ;;  %v538_v41 = vadd.f32 %v5216_v39, %v5048_v28  ;;  %v529_v42 = vpop.f32.mrb[3].mxu0 }
  0xf2   : > { %v1271_v40 = vpack.c.bf16 %v614_v34, %v611_v33  ;;  %v530_v43 = vadd.f32 %v5048_v28, %v529_v42 }
  0xf3   : > { %v5718_v45 = vpack.c.bf16 %v538_v41, %v535_v35  ;;  %v1323_v16 = vshrl.u32 %v5714_v37, 16 }
  0xf4   : > { %1295 = vrot.lane.b32.xlu1 %v1271_v40, %s5564_s16  ;;  %1279 = vrot.lane.b32.xlu0 %v1271_v40, %s5565_s24  ;;  %v5227_v44 = vpop.f32.mrb[4].mxu1  ;;  %v5720_v48 = vpack.c.bf16 %v530_v43, %v527_v38  ;;  %v1307_v5 = vshrl.u32 %v1271_v40, 16 }
  0xf5   : > { %v635_v46 = vadd.f32 %v5227_v44, %v5053_v25  ;;  %v626_v47 = vpop.f32.mrb[5].mxu1  ;;  %v771_v18 = vshrl.u32 %v5718_v45, 16 }
  0xf6   : > { %v627_v49 = vadd.f32 %v5053_v25, %v626_v47  ;;  %v5228_v50 = vpop.f32.mrb[6].mxu1  ;;  %v749_v28 = vshrl.u32 %v5720_v48, 16 }
  0xf7   : > { %v638_v51 = vadd.f32 %v5228_v50, %v5053_v25  ;;  %v629_v52 = vpop.f32.mrb[7].mxu1 }
  0xf8   : > { %1281 = vrot.lane.b32.xlu1 %v5714_v37, %s5565_s24  ;;  %1287 = vrot.lane.b32.xlu0 %v1271_v40, %s5566_s26  ;;  %v630_v53 = vadd.f32 %v5053_v25, %v629_v52 }
  0xf9   : > { %v5725_v54 = vpack.c.bf16 %v638_v51, %v635_v46 }
  0xfa   : > { %v5727_v55 = vpack.c.bf16 %v630_v53, %v627_v49 }
  0xfb   : > { %v1355_v56 = vshrl.u32 %v5725_v54, 16 }
  0xfc   : > { %1297 = vrot.lane.b32.xlu1 %v5714_v37, %s5564_s16  ;;  %1289 = vrot.lane.b32.xlu0 %v5714_v37, %s5566_s26 }
 0x100   : > { %1291 = vrot.lane.b32.xlu1 %v5727_v55, %s5566_s26  ;;  %1283 = vrot.lane.b32.xlu0 %v5727_v55, %s5565_s24 }
 0x104   : > { %1285 = vrot.lane.b32.xlu1 %v5725_v54, %s5565_s24  ;;  %1299 = vrot.lane.b32.xlu0 %v5727_v55, %s5564_s16 }
 0x108   : > { %1301 = vrot.lane.b32.xlu1 %v5725_v54, %s5564_s16  ;;  %1293 = vrot.lane.b32.xlu0 %v5725_v54, %s5566_s26 }
 0x10c   : > { %737 = vrot.lane.b32.xlu1 %v5720_v48, %s5566_s26  ;;  %733 = vrot.lane.b32.xlu0 %v5720_v48, %s5565_s24 }
 0x110   : > { %735 = vrot.lane.b32.xlu1 %v5718_v45, %s5565_s24  ;;  %741 = vrot.lane.b32.xlu0 %v5720_v48, %s5564_s16 }
 0x114   : > { %743 = vrot.lane.b32.xlu1 %v5718_v45, %s5564_s16  ;;  %739 = vrot.lane.b32.xlu0 %v5718_v45, %s5566_s26 }
 0x166   : > { %v1296_v61 = vpop.permute.xlu1 %1295  ;;  %v1280_v0 = vpop.permute.xlu0 %1279 }
 0x167   : > { %v1305_v3 = vpack.i.b16 %v1280_v0, %v1271_v40  ;;  %v1308_v4 = vshrl.u32 %v1280_v0, 16  ;;  %v1316_v12 = vshrl.u32 %v1296_v61, 16 }
 0x169   : > { %v1309_v10 = vpack.i.b16 %v1308_v4, %v1307_v5  ;;  %v1367_v11 = vcombine.high %v1305_v3, %v5760_v2  ;;  %v1374_v19 = vrot.slane %v1305_v3, %v5763_v7 }
 0x16a   : > { %v1282_v8 = vpop.permute.xlu1 %1281  ;;  %v1288_v9 = vpop.permute.xlu0 %1287 }
 0x16b   : > { %v1324_v13 = vshrl.u32 %v1282_v8, 16  ;;  %v1313_v14 = vpack.i.b16 %v1296_v61, %v1288_v9  ;;  %v1315_v15 = vshrl.u32 %v1288_v9, 16  ;;  %v1381_v24 = vrot.slane %v1367_v11, %v5763_v7 }
 0x16c   : > { %v1433_v25 = vcombine.high %v1309_v10, %v5760_v2  ;;  %v1440_v26 = vrot.slane %v1309_v10, %v5763_v7  ;;  %v1321_v29 = vpack.i.b16 %v1282_v8, %v5714_v37  ;;  %v1339_v61 = vshrl.u32 %v5727_v55, 16 }
 0x16d   : > { %v1317_v20 = vpack.i.b16 %v1316_v12, %v1315_v15  ;;  %v1382_v21 = vcombine.high %v1313_v14, %v5760_v2  ;;  %v1389_v22 = vrot.slane %v1313_v14, %v5763_v7  ;;  %v1325_v30 = vpack.i.b16 %v1324_v13, %v1323_v16 }
 0x16e   : > { %v1298_v23 = vpop.permute.xlu1 %1297  ;;  %v1290_v27 = vpop.permute.xlu0 %1289  ;;  %v1447_v42 = vrot.slane %v1433_v25, %v5763_v7  ;;  %v1499_v46 = vcombine.high %v1321_v29, %v5760_v2  ;;  %v1506_v62 = vrot.slane %v1321_v29, %v5763_v7 }
 0x16f   : > { %v1396_v31 = vrot.slane %v1382_v21, %v5763_v7  ;;  %v1397_v32 = vcombine.low %v1374_v19, %v1389_v22  ;;  %v1398_v33 = vcombine.high %v1374_v19, %v1389_v22  ;;  %v1448_v34 = vcombine.high %v1317_v20, %v5760_v2  ;;  %v5811_v25 = vpop.f32.mrb[4].mxu0 }
 0x170   : > { %v1455_v35 = vrot.slane %v1317_v20, %v5763_v7  ;;  %v1332_v36 = vshrl.u32 %v1298_v23, 16  ;;  %v1329_v40 = vpack.i.b16 %v1298_v23, %v1290_v27  ;;  %v1331_v41 = vshrl.u32 %v1290_v27, 16 }
 0x171   : > { %v1413_v38 = vcombine.low %v1381_v24, %v1396_v31  ;;  %v1414_v39 = vcombine.high %v1381_v24, %v1396_v31  ;;  %v1462_v43 = vrot.slane %v1448_v34, %v5763_v7  ;;  %v1565_v47 = vcombine.high %v1325_v30, %v5760_v2  ;;  %v5815_v31 = vpop.f32.mrb[5].mxu0 }
 0x172   : > { %v1463_v44 = vcombine.low %v1440_v26, %v1455_v35  ;;  %v1464_v37 = vcombine.high %v1440_v26, %v1455_v35  ;;  %v1405_v49 = vrot.slane %v1397_v32, %v5768_v17  ;;  %v1412_v50 = vrot.slane %v1398_v33, %v5768_v17  ;;  %v5800_v9 = vpop.permute.xlu1 %1291  ;;  %v1284_v10 = vpop.permute.xlu0 %1283 }
 0x173   : > { %v1421_v51 = vrot.slane %v1413_v38, %v5768_v17  ;;  %v1428_v52 = vrot.slane %v1414_v39, %v5768_v17  ;;  %v1479_v53 = vcombine.low %v1447_v42, %v1462_v43  ;;  %v1333_v57 = vpack.i.b16 %v1332_v36, %v1331_v41  ;;  %v5818_v36 = vpop.f32.mrb[6].mxu0 }
 0x174   : > { %v1514_v59 = vcombine.high %v1329_v40, %v5760_v2  ;;  %v1521_v60 = vrot.slane %v1329_v40, %v5763_v7  ;;  %v1471_v0 = vrot.slane %v1463_v44, %v5768_v17  ;;  %v1478_v1 = vrot.slane %v1464_v37, %v5768_v17 }
 0x175   : > { %v1480_v3 = vcombine.high %v1447_v42, %v1462_v43  ;;  %v1513_v4 = vrot.slane %v1499_v46, %v5763_v7  ;;  %v1572_v5 = vrot.slane %v1325_v30, %v5763_v7  ;;  %v1579_v6 = vrot.slane %v1565_v47, %v5763_v7 }
 0x176   : > { %v1895_v8 = vcombine.low %v1405_v49, %v1412_v50  ;;  %v5803_v11 = vrot.slane %v1479_v53, %v5768_v17  ;;  %v5075_v12 = vcombine.high %v1405_v49, %v1412_v50  ;;  %v1911_v13 = vcombine.low %v1421_v51, %v1428_v52  ;;  %v1286_v42 = vpop.permute.xlu1 %1285  ;;  %v1300_v43 = vpop.permute.xlu0 %1299 }
 0x177   : > { %v5076_v14 = vcombine.high %v1421_v51, %v1428_v52  ;;  %v1528_v15 = vrot.slane %v1514_v59, %v5763_v7  ;;  %v1529_v16 = vcombine.low %v1506_v62, %v1521_v60  ;;  %v1530_v19 = vcombine.high %v1506_v62, %v1521_v60  ;;  %v5831_v49 = vpop.f32.mrb[7].mxu0 }
 0x178   : > { %v1580_v20 = vcombine.high %v1333_v57, %v5760_v2  ;;  %v5808_v21 = vrot.slane %v1480_v3, %v5768_v17  ;;  %v1945_v22 = vcombine.low %v1471_v0, %v1478_v1  ;;  %v5077_v23 = vcombine.high %v1471_v0, %v1478_v1  ;;  %6986 = vst [vmem:[#allocation3_spill] sm:$0xff] %v5831_v49 }
 0x179   : > { %v1587_v24 = vrot.slane %v1333_v57, %v5763_v7  ;;  %v1537_v26 = vrot.slane %v1529_v16, %v5768_v17  ;;  %v1544_v27 = vrot.slane %v1530_v19, %v5768_v17  ;;  %v1545_v29 = vcombine.low %v1513_v4, %v1528_v15 }
 0x17a   : > { %v1546_v30 = vcombine.high %v1513_v4, %v1528_v15  ;;  %v1594_v32 = vrot.slane %v1580_v20, %v5763_v7  ;;  %v1340_v35 = vshrl.u32 %v1284_v10, 16  ;;  %v5821_v38 = vrot.slane %v1895_v8, %v5763_v7  ;;  %v1294_v15 = vpop.permute.xlu0 %1293 }
 0x17b   : > { %v1595_v33 = vcombine.low %v1572_v5, %v1587_v24  ;;  %v1596_v34 = vcombine.high %v1572_v5, %v1587_v24  ;;  %v5824_v39 = vrot.slane %v5075_v12, %v5763_v7  ;;  %v1553_v40 = vrot.slane %v1545_v29, %v5768_v17 }
 0x17c   : > { %v1560_v41 = vrot.slane %v1546_v30, %v5768_v17  ;;  %v5829_v44 = vrot.slane %v1911_v13, %v5763_v7  ;;  %v1611_v37 = vcombine.low %v1579_v6, %v1594_v32  ;;  %v1995_v46 = vcombine.low %v1537_v26, %v1544_v27 }
 0x17d   : > { %v5079_v47 = vcombine.high %v1537_v26, %v1544_v27  ;;  %v1603_v50 = vrot.slane %v1595_v33, %v5768_v17  ;;  %v1610_v51 = vrot.slane %v1596_v34, %v5768_v17  ;;  %v1612_v52 = vcombine.high %v1579_v6, %v1594_v32 }
 0x17e   : > { %v1337_v53 = vpack.i.b16 %v1284_v10, %v5727_v55  ;;  %v5837_v57 = vrot.slane %v5076_v14, %v5763_v7  ;;  %v5840_v59 = vrot.slane %v1945_v22, %v5763_v7  ;;  %v5843_v60 = vrot.slane %v5077_v23, %v5763_v7  ;;  %v1302_v14 = vpop.permute.xlu1 %1301 }
 0x17f   : > { %v1341_v62 = vpack.i.b16 %v1340_v35, %v1339_v61  ;;  %v1961_v0 = vcombine.low %v5803_v11, %v5808_v21  ;;  %v5078_v1 = vcombine.high %v5803_v11, %v5808_v21  ;;  %v2011_v3 = vcombine.low %v1553_v40, %v1560_v41 }
 0x180   : > { %v5080_v4 = vcombine.high %v1553_v40, %v1560_v41  ;;  %v5850_v55 = vrot.slane %v1611_v37, %v5768_v17  ;;  %v5853_v5 = vrot.slane %v1995_v46, %v5763_v7  ;;  %v5856_v6 = vrot.slane %v5079_v47, %v5763_v7 }
 0x181   : > { %v1347_v8 = vshrl.u32 %v5800_v9, 16  ;;  %v5860_v61 = vrot.slane %v1612_v52, %v5768_v17  ;;  %v2045_v10 = vcombine.low %v1603_v50, %v1610_v51  ;;  %v5081_v12 = vcombine.high %v1603_v50, %v1610_v51 }
 0x182   : > { %v1631_v13 = vcombine.high %v1337_v53, %v5760_v2  ;;  %v1697_v16 = vcombine.high %v1341_v62, %v5760_v2  ;;  %v1356_v19 = vshrl.u32 %v1286_v42, 16  ;;  %v1345_v20 = vpack.i.b16 %v1300_v43, %v5800_v9 }
 0x183   : > { %v1348_v22 = vshrl.u32 %v1300_v43, 16  ;;  %v5866_v23 = vrot.slane %v2011_v3, %v5763_v7  ;;  %v5869_v24 = vrot.slane %v5080_v4, %v5763_v7  ;;  %v1638_v26 = vrot.slane %v1337_v53, %v5763_v7 }
 0x184   : > { %v1353_v27 = vpack.i.b16 %v1286_v42, %v5725_v54  ;;  %v1646_v30 = vcombine.high %v1345_v20, %v5760_v2  ;;  %v1653_v32 = vrot.slane %v1345_v20, %v5763_v7  ;;  %v1361_v33 = vpack.i.b16 %v1302_v14, %v1294_v15 }
 0x185   : > { %v1349_v29 = vpack.i.b16 %v1348_v22, %v1347_v8  ;;  %v5876_v34 = vrot.slane %v2045_v10, %v5763_v7  ;;  %v1645_v9 = vrot.slane %v1631_v13, %v5763_v7  ;;  %v1704_v35 = vrot.slane %v1341_v62, %v5763_v7 }
 0x186   : > { %v1364_v40 = vshrl.u32 %v1302_v14, 16  ;;  %v1711_v41 = vrot.slane %v1697_v16, %v5763_v7  ;;  %v1357_v43 = vpack.i.b16 %v1356_v19, %v1355_v56  ;;  %v1660_v42 = vrot.slane %v1646_v30, %v5763_v7 }
 0x187   : > { %v1661_v37 = vcombine.low %v1638_v26, %v1653_v32  ;;  %v1763_v46 = vcombine.high %v1353_v27, %v5760_v2  ;;  %v1662_v47 = vcombine.high %v1638_v26, %v1653_v32  ;;  %v1712_v50 = vcombine.high %v1349_v29, %v5760_v2 }
 0x188   : > { %v1719_v51 = vrot.slane %v1349_v29, %v5763_v7  ;;  %v1677_v52 = vcombine.low %v1645_v9, %v1660_v42  ;;  %v1678_v53 = vcombine.high %v1645_v9, %v1660_v42  ;;  %v1778_v62 = vcombine.high %v1361_v33, %v5760_v2 }
 0x189   : > { %v1785_v3 = vrot.slane %v1361_v33, %v5763_v7  ;;  %v1726_v4 = vrot.slane %v1712_v50, %v5763_v7  ;;  %v1363_v8 = vshrl.u32 %v1294_v15, 16  ;;  %v1770_v10 = vrot.slane %v1353_v27, %v5763_v7 }
 0x18a   : > { %v1727_v54 = vcombine.low %v1704_v35, %v1719_v51  ;;  %v1728_v56 = vcombine.high %v1704_v35, %v1719_v51  ;;  %v1829_v13 = vcombine.high %v1357_v43, %v5760_v2  ;;  %v1669_v14 = vrot.slane %v1661_v37, %v5768_v17 }
 0x18b   : > { %v1676_v16 = vrot.slane %v1662_v47, %v5768_v17  ;;  %v5895_v19 = vrot.slane %v5081_v12, %v5763_v7  ;;  %v1685_v20 = vrot.slane %v1677_v52, %v5768_v17  ;;  %v1692_v22 = vrot.slane %v1678_v53, %v5768_v17 }
 0x18c   : > { %v1743_v26 = vcombine.low %v1711_v41, %v1726_v4  ;;  %v1792_v27 = vrot.slane %v1778_v62, %v5763_v7  ;;  %v1793_v30 = vcombine.low %v1770_v10, %v1785_v3  ;;  %v1735_v32 = vrot.slane %v1727_v54, %v5768_v17 }
 0x18d   : > { %v1742_v33 = vrot.slane %v1728_v56, %v5768_v17  ;;  %v1744_v12 = vcombine.high %v1711_v41, %v1726_v4  ;;  %v1365_v9 = vpack.i.b16 %v1364_v40, %v1363_v8  ;;  %v1777_v35 = vrot.slane %v1763_v46, %v5763_v7  ;;  %v738_v4 = vpop.permute.xlu1 %737  ;;  %v734_v8 = vpop.permute.xlu0 %733 }
 0x18e   : > { %v1836_v42 = vrot.slane %v1357_v43, %v5763_v7  ;;  %v1843_v37 = vrot.slane %v1829_v13, %v5763_v7  ;;  %v2095_v47 = vcombine.low %v1669_v14, %v1676_v16  ;;  %v5910_v50 = vrot.slane %v1743_v26, %v5768_v17 }
 0x18f   : > { %v5083_v51 = vcombine.high %v1669_v14, %v1676_v16  ;;  %v2111_v52 = vcombine.low %v1685_v20, %v1692_v22  ;;  %v5084_v53 = vcombine.high %v1685_v20, %v1692_v22  ;;  %v1794_v62 = vcombine.high %v1770_v10, %v1785_v3 }
 0x190   : > { %v1801_v54 = vrot.slane %v1793_v30, %v5768_v17  ;;  %v1809_v58 = vcombine.low %v1777_v35, %v1792_v27  ;;  %v1810_v56 = vcombine.high %v1777_v35, %v1792_v27  ;;  %v5914_v40 = vrot.slane %v1744_v12, %v5768_v17 }
 0x191   : > { %v2145_v41 = vcombine.low %v1735_v32, %v1742_v33  ;;  %v1844_v43 = vcombine.high %v1365_v9, %v5760_v2  ;;  %v1851_v46 = vrot.slane %v1365_v9, %v5763_v7  ;;  %v5085_v13 = vcombine.high %v1735_v32, %v1742_v33 }
 0x192   : > { %v1808_v14 = vrot.slane %v1794_v62, %v5768_v17  ;;  %v1817_v16 = vrot.slane %v1809_v58, %v5768_v17  ;;  %v1824_v3 = vrot.slane %v1810_v56, %v5768_v17  ;;  %v5922_v10 = vrot.slane %v2095_v47, %v5763_v7 }
 0x193   : > { %v1858_v20 = vrot.slane %v1844_v43, %v5763_v7  ;;  %v1859_v22 = vcombine.low %v1836_v42, %v1851_v46  ;;  %v1860_v26 = vcombine.high %v1836_v42, %v1851_v46  ;;  %v5926_v27 = vrot.slane %v5083_v51, %v5763_v7 }
 0x194   : > { %v5929_v30 = vrot.slane %v2111_v52, %v5763_v7  ;;  %v2195_v32 = vcombine.low %v1801_v54, %v1808_v14  ;;  %v747_v33 = vpack.i.b16 %v734_v8, %v5720_v48  ;;  %v5935_v47 = vrot.slane %v5084_v53, %v5763_v7 }
 0x195   : > { %v1867_v58 = vrot.slane %v1859_v22, %v5768_v17  ;;  %v1874_v12 = vrot.slane %v1860_v26, %v5768_v17  ;;  %v1875_v9 = vcombine.low %v1843_v37, %v1858_v20  ;;  %v1876_v35 = vcombine.high %v1843_v37, %v1858_v20  ;;  %v736_v22 = vpop.permute.xlu1 %735 }
 0x196   : > { %v5087_v62 = vcombine.high %v1801_v54, %v1808_v14  ;;  %v2211_v42 = vcombine.low %v1817_v16, %v1824_v3  ;;  %v750_v56 = vshrl.u32 %v734_v8, 16  ;;  %v5938_v51 = vrot.slane %v2145_v41, %v5763_v7  ;;  %v742_v14 = vpop.permute.xlu0 %741 }
 0x197   : > { %v5941_v52 = vrot.slane %v5085_v13, %v5763_v7  ;;  %v5088_v46 = vcombine.high %v1817_v16, %v1824_v3  ;;  %v2245_v20 = vcombine.low %v1867_v58, %v1874_v12  ;;  %v5089_v53 = vcombine.high %v1867_v58, %v1874_v12 }
 0x198   : > { %v783_v54 = vcombine.high %v747_v33, %v5760_v2  ;;  %v5949_v8 = vrot.slane %v1875_v9, %v5768_v17  ;;  %v5952_v41 = vrot.slane %v1876_v35, %v5768_v17  ;;  %v5955_v13 = vrot.slane %v2195_v32, %v5763_v7 }
 0x199   : > { %v757_v26 = vshrl.u32 %v738_v4, 16  ;;  %v5958_v16 = vrot.slane %v5087_v62, %v5763_v7  ;;  %v5961_v3 = vrot.slane %v2211_v42, %v5763_v7  ;;  %v751_v58 = vpack.i.b16 %v750_v56, %v749_v28 }
 0x19a   : > { %v772_v12 = vshrl.u32 %v736_v22, 16  ;;  %v5966_v9 = vrot.slane %v5088_v46, %v5763_v7  ;;  %v790_v35 = vrot.slane %v747_v33, %v5763_v7  ;;  %v755_v37 = vpack.i.b16 %v742_v14, %v738_v4 }
 0x19b   : > { %v758_v43 = vshrl.u32 %v742_v14, 16  ;;  %v5970_v32 = vrot.slane %v2245_v20, %v5763_v7  ;;  %v5973_v62 = vrot.slane %v5089_v53, %v5763_v7  ;;  %v797_v42 = vrot.slane %v783_v54, %v5763_v7 }
 0x19c   : > { %v769_v15 = vpack.i.b16 %v736_v22, %v5718_v45  ;;  %v798_v56 = vcombine.high %v755_v37, %v5760_v2  ;;  %v805_v33 = vrot.slane %v755_v37, %v5763_v7  ;;  %v849_v46 = vcombine.high %v751_v58, %v5760_v2 }
 0x19d   : > { %v759_v28 = vpack.i.b16 %v758_v43, %v757_v26  ;;  %v773_v20 = vpack.i.b16 %v772_v12, %v771_v18  ;;  %v1935_v53 = vcombine.low %v5829_v44, %v5837_v57  ;;  %v856_v26 = vrot.slane %v751_v58, %v5763_v7 }
 0x19e   : > { %v812_v22 = vrot.slane %v798_v56, %v5763_v7  ;;  %v813_v54 = vcombine.low %v790_v35, %v805_v33  ;;  %v814_v14 = vcombine.high %v790_v35, %v805_v33  ;;  %v915_v37 = vcombine.high %v769_v15, %v5760_v2 }
 0x19f   : > { %v864_v43 = vcombine.high %v759_v28, %v5760_v2  ;;  %v871_v4 = vrot.slane %v759_v28, %v5763_v7  ;;  %v1927_v48 = vcombine.low %v5821_v38, %v5824_v39  ;;  %v863_v12 = vrot.slane %v849_v46, %v5763_v7 }
 0x1a0   : > { %v821_v45 = vrot.slane %v813_v54, %v5768_v17  ;;  %v828_v18 = vrot.slane %v814_v14, %v5768_v17  ;;  %v829_v44 = vcombine.low %v797_v42, %v812_v22  ;;  %v830_v57 = vcombine.high %v797_v42, %v812_v22 }
 0x1a1   : > { %v878_v35 = vrot.slane %v864_v43, %v5763_v7  ;;  %v879_v56 = vcombine.low %v856_v26, %v871_v4  ;;  %v880_v33 = vcombine.high %v856_v26, %v871_v4  ;;  %v981_v58 = vcombine.high %v773_v20, %v5760_v2  ;;  %v744_v43 = vpop.permute.xlu1 %743  ;;  %v740_v26 = vpop.permute.xlu0 %739 }
 0x1a2   : > { %v6001_v29 = vrot.slane %v1935_v53, %v5768_v17  ;;  %v1968_v38 = vrot.slane %v1961_v0, %v5763_v7  ;;  %v1976_v39 = vrot.slane %v5078_v1, %v5763_v7  ;;  %v6012_v42 = vrot.slane %v829_v44, %v5768_v17 }
 0x1a3   : > { %v6015_v28 = vrot.slane %v830_v57, %v5768_v17  ;;  %v1047_v4 = vcombine.low %v821_v45, %v828_v18  ;;  %v5067_v46 = vcombine.high %v821_v45, %v828_v18  ;;  %v922_v53 = vrot.slane %v769_v15, %v5763_v7 }
 0x1a4   : > { %v929_v22 = vrot.slane %v915_v37, %v5763_v7  ;;  %v6020_v0 = vrot.slane %v1927_v48, %v5768_v17  ;;  %v1977_v11 = vcombine.low %v5840_v59, %v5843_v60  ;;  %v6025_v21 = vrot.slane %v879_v56, %v5768_v17 }
 0x1a5   : > { %v6028_v1 = vrot.slane %v880_v33, %v5768_v17  ;;  %v895_v54 = vcombine.low %v863_v12, %v878_v35  ;;  %v896_v14 = vcombine.high %v863_v12, %v878_v35  ;;  %v988_v15 = vrot.slane %v773_v20, %v5763_v7 }
 0x1a6   : > { %v995_v37 = vrot.slane %v981_v58, %v5763_v7  ;;  %v1943_v48 = vcombine.low %v6020_v0, %v6001_v29  ;;  %v1985_v45 = vcombine.low %v1968_v38, %v1976_v39  ;;  %v6035_v59 = vrot.slane %v1047_v4, %v5763_v7 }
 0x1a7   : > { %v6038_v60 = vrot.slane %v5067_v46, %v5763_v7  ;;  %v1063_v18 = vcombine.low %v6012_v42, %v6015_v28  ;;  %v5068_v44 = vcombine.high %v6012_v42, %v6015_v28  ;;  %v6045_v20 = vrot.slane %v1977_v11, %v5768_v17 }
 0x1a8   : > { %v6048_v57 = vrot.slane %v1985_v45, %v5768_v17  ;;  %v780_v12 = vshrl.u32 %v744_v43, 16  ;;  %v777_v35 = vpack.i.b16 %v744_v43, %v740_v26  ;;  %v6051_v56 = vrot.slane %v895_v54, %v5768_v17 }
 0x1a9   : > { %v6054_v33 = vrot.slane %v896_v14, %v5768_v17  ;;  %v1097_v58 = vcombine.low %v6025_v21, %v6028_v1  ;;  %v779_v38 = vshrl.u32 %v740_v26, 16  ;;  %v5069_v39 = vcombine.high %v6025_v21, %v6028_v1 }
 0x1aa   : > { %v1993_v42 = vcombine.low %v6045_v20, %v6048_v57  ;;  %v930_v28 = vcombine.high %v777_v35, %v5760_v2  ;;  %v937_v4 = vrot.slane %v777_v35, %v5763_v7  ;;  %v2298_v46 = vshrl.u32 %v1943_v48, 16 }
 0x1ab   : > { %v781_v11 = vpack.i.b16 %v780_v12, %v779_v38  ;;  %v2035_v54 = vcombine.low %v5866_v23, %v5869_v24  ;;  %v6987_v14 = vcombine.low %v5850_v55, %v5860_v61  ;;  %v6988_v12 = vcombine.high %v5850_v55, %v5860_v61 }
 0x1ac   : > { %v2297_v26 = vpack.i.b16 %v1993_v42, %v1943_v48  ;;  %v2299_v45 = vshrl.u32 %v1993_v42, 16  ;;  %v944_v21 = vrot.slane %v930_v28, %v5763_v7  ;;  %v945_v1 = vcombine.low %v922_v53, %v937_v4 }
 0x1ad   : > { %v2068_v43 = vrot.slane %v6987_v14, %v5763_v7  ;;  %v946_v63 = vcombine.high %v922_v53, %v937_v4  ;;  %v996_v49 = vcombine.high %v781_v11, %v5760_v2  ;;  %v1003_v35 = vrot.slane %v781_v11, %v5763_v7 }
 0x1ae   : > { %v2076_v23 = vrot.slane %v6988_v12, %v5763_v7  ;;  %5345 = vmatprep.subr.msk.bf16.mxu1 %vm3431_vm1, %v2297_v26  ;;  %v3439_v24 = vsel %vm3431_vm1, %v2297_v26, 0  ;;  %v2300_v38 = vpack.i.b16 %v2299_v45, %v2298_v46  ;;  %v6080_v48 = vrot.slane %v945_v1, %v5768_v17 }
 0x1af   : > { %v961_v42 = vcombine.low %v929_v22, %v944_v21  ;;  %5242 = vmatpush3.bf16.xpose.msra.mxu1 %v3439_v24  ;;  %v6083_v53 = vrot.slane %v946_v63, %v5768_v17  ;;  %v962_v28 = vcombine.high %v929_v22, %v944_v21  ;;  %v1010_v4 = vrot.slane %v996_v49, %v5763_v7 }
 0x1b0   : > { %v1011_v11 = vcombine.low %v988_v15, %v1003_v35  ;;  %5349 = vmatprep.subr.msk.bf16.mxu0 %vm3431_vm1, %v2300_v38  ;;  %v1012_v61 = vcombine.high %v988_v15, %v1003_v35  ;;  %v3506_v14 = vsel %vm3431_vm1, %v2300_v38, 0  ;;  %v2027_v46 = vcombine.low %v5853_v5, %v5856_v6 }
 0x1b1   : > { %v969_v55 = vrot.slane %v961_v42, %v5768_v17  ;;  %v976_v26 = vrot.slane %v962_v28, %v5768_v17  ;;  %v1027_v63 = vcombine.low %v995_v37, %v1010_v4  ;;  %v1028_v1 = vcombine.high %v995_v37, %v1010_v4  ;;  %5254 = vmatpush3.bf16.xpose.msra.mxu0 %v3506_v14 }
 0x1b2   : > { %v1019_v45 = vrot.slane %v1011_v11, %v5768_v17  ;;  %v1026_v49 = vrot.slane %v1012_v61, %v5768_v17  ;;  %v6095_v22 = vrot.slane %v2035_v54, %v5768_v17  ;;  %v2077_v15 = vcombine.low %v5876_v34, %v5895_v19 }
 0x1b3   : > { %v2085_v21 = vcombine.low %v2068_v43, %v2076_v23  ;;  %v6100_v35 = vrot.slane %v1063_v18, %v5763_v7  ;;  %v1035_v5 = vrot.slane %v1027_v63, %v5768_v17  ;;  %v1042_v6 = vrot.slane %v1028_v1, %v5768_v17 }
 0x1b4   : > { %v1147_v37 = vcombine.low %v6080_v48, %v6083_v53  ;;  %v6107_v12 = vrot.slane %v5068_v44, %v5763_v7  ;;  %v1163_v24 = vcombine.low %v969_v55, %v976_v26  ;;  %v5072_v54 = vcombine.high %v969_v55, %v976_v26 }
 0x1b5   : > { %v6110_v38 = vrot.slane %v2027_v46, %v5768_v17  ;;  %v6113_v34 = vrot.slane %v1097_v58, %v5763_v7  ;;  %v6116_v19 = vrot.slane %v5069_v39, %v5763_v7  ;;  %v1113_v18 = vcombine.low %v6051_v56, %v6054_v33 }
 0x1b6   : > { %v1197_v43 = vcombine.low %v1019_v45, %v1026_v49  ;;  %v5073_v23 = vcombine.high %v1019_v45, %v1026_v49  ;;  %v6123_v42 = vrot.slane %v2077_v15, %v5768_v17  ;;  %v6126_v28 = vrot.slane %v2085_v21, %v5768_v17 }
 0x1b7   : > { %v2043_v44 = vcombine.low %v6110_v38, %v6095_v22  ;;  %v5070_v58 = vcombine.high %v6051_v56, %v6054_v33  ;;  %v6131_v39 = vrot.slane %v1147_v37, %v5763_v7  ;;  %v5071_v4 = vcombine.high %v6080_v48, %v6083_v53 }
 0x1b8   : > { %v1213_v11 = vcombine.low %v1035_v5, %v1042_v6  ;;  %v6136_v55 = vrot.slane %v1163_v24, %v5763_v7  ;;  %v6139_v61 = vrot.slane %v5072_v54, %v5763_v7  ;;  %v2093_v14 = vcombine.low %v6123_v42, %v6126_v28 }
 0x1b9   : > { %v2127_v46 = vcombine.low %v5922_v10, %v5926_v27  ;;  %v6146_v56 = vrot.slane %v1197_v43, %v5763_v7  ;;  %v5074_v33 = vcombine.high %v1035_v5, %v1042_v6  ;;  %v2135_v48 = vcombine.low %v5929_v30, %v5935_v47 }
 0x1ba   : > { %v6989_v53 = vcombine.low %v5910_v50, %v5914_v40  ;;  %v6155_v45 = vrot.slane %v5073_v23, %v5763_v7  ;;  %v2309_v63 = vpack.i.b16 %v2093_v14, %v2043_v44  ;;  %v2310_v1 = vshrl.u32 %v2043_v44, 16 }
 0x1bb   : > { %v2311_v49 = vshrl.u32 %v2093_v14, 16  ;;  %v1220_v10 = vrot.slane %v1213_v11, %v5763_v7  ;;  %v6159_v27 = vrot.slane %v2127_v46, %v5768_v17  ;;  %v6162_v15 = vrot.slane %v2135_v48, %v5768_v17 }
 0x1bc   : > { %v2168_v26 = vrot.slane %v6989_v53, %v5763_v7  ;;  %v6990_v30 = vcombine.high %v5910_v50, %v5914_v40  ;;  %5346 = vmatprep.subr.msk.bf16.mxu1 %vm3431_vm1, %v2309_v63  ;;  %v3442_v5 = vsel %vm3431_vm1, %v2309_v63, 0  ;;  %v2177_v6 = vcombine.low %v5938_v51, %v5941_v52 }
 0x1bd   : > { %v2312_v21 = vpack.i.b16 %v2311_v49, %v2310_v1  ;;  %v2227_v37 = vcombine.low %v5955_v13, %v5958_v16  ;;  %v1228_v24 = vrot.slane %v5074_v33, %v5763_v7  ;;  %5244 = vmatpush3.bf16.xpose.msra.mxu1 %v3442_v5  ;;  %v2235_v43 = vcombine.low %v5961_v3, %v5966_v9 }
 0x1be   : > { %v2176_v47 = vrot.slane %v6990_v30, %v5763_v7  ;;  %v6991_v50 = vcombine.low %v5949_v8, %v5952_v41  ;;  %v2143_v51 = vcombine.low %v6159_v27, %v6162_v15  ;;  %v6186_v52 = vrot.slane %v2177_v6, %v5768_v17 }
 0x1bf   : > { %5350 = vmatprep.subr.msk.bf16.mxu0 %vm3431_vm1, %v2312_v21  ;;  %v3509_v23 = vsel %vm3431_vm1, %v2312_v21, 0  ;;  %v6992_v13 = vcombine.high %v5949_v8, %v5952_v41  ;;  %v6196_v9 = vrot.slane %v2227_v37, %v5768_v17  ;;  %v6199_v44 = vrot.slane %v2235_v43, %v5768_v17 }
 0x1c0   : > { %v2185_v54 = vcombine.low %v2168_v26, %v2176_v47  ;;  %v2268_v40 = vrot.slane %v6991_v50, %v5763_v7  ;;  %5256 = vmatpush3.bf16.xpose.msra.mxu0 %v3509_v23  ;;  %v2277_v11 = vcombine.low %v5970_v32, %v5973_v62  ;;  %v1079_v46 = vcombine.low %v6035_v59, %v6038_v60 }
 0x1c1   : > { %v2276_v16 = vrot.slane %v6992_v13, %v5763_v7  ;;  %v1087_v8 = vcombine.low %v6100_v35, %v6107_v12  ;;  %v1120_v41 = vrot.slane %v1113_v18, %v5763_v7  ;;  %v2243_v48 = vcombine.low %v6196_v9, %v6199_v44 }
 0x1c2   : > { %v6193_v3 = vrot.slane %v2185_v54, %v5768_v17  ;;  %v6213_v53 = vrot.slane %v2277_v11, %v5768_v17  ;;  %v1128_v32 = vrot.slane %v5070_v58, %v5763_v7  ;;  %v1086_v59 = vrot.slane %v1079_v46, %v5768_v17 }
 0x1c3   : > { %v2285_v14 = vcombine.low %v2268_v40, %v2276_v16  ;;  %v1094_v60 = vrot.slane %v1087_v8, %v5768_v17  ;;  %v1129_v35 = vcombine.low %v6113_v34, %v6116_v19  ;;  %v2322_v18 = vshrl.u32 %v2143_v51, 16 }
 0x1c4   : > { %v2193_v33 = vcombine.low %v6186_v52, %v6193_v3  ;;  %v1137_v63 = vcombine.low %v1120_v41, %v1128_v32  ;;  %v1162_v1 = vrot.slane %v5071_v4, %v5763_v7  ;;  %v1237_v49 = vcombine.low %v1220_v10, %v1228_v24 }
 0x1c5   : > { %v6217_v62 = vrot.slane %v2285_v14, %v5768_v17  ;;  %v1095_v30 = vcombine.low %v1086_v59, %v1094_v60  ;;  %v1136_v5 = vrot.slane %v1129_v35, %v5768_v17  ;;  %v1187_v19 = vcombine.low %v6136_v55, %v6139_v61 }
 0x1c6   : > { %v2321_v12 = vpack.i.b16 %v2193_v33, %v2143_v51  ;;  %v2323_v26 = vshrl.u32 %v2193_v33, 16  ;;  %v1144_v34 = vrot.slane %v1137_v63, %v5768_v17  ;;  %v2334_v4 = vshrl.u32 %v2243_v48, 16 }
 0x1c7   : > { %v2293_v58 = vcombine.low %v6213_v53, %v6217_v62  ;;  %v1229_v37 = vcombine.low %v6146_v56, %v6155_v45  ;;  %v1994_v43 = vcombine.high %v6045_v20, %v6048_v57  ;;  %v1179_v50 = vcombine.low %v6131_v39, %v1162_v1 }
 0x1c8   : > { %5347 = vmatprep.subr.msk.bf16.mxu1 %vm3431_vm1, %v2321_v12  ;;  %v2324_v47 = vpack.i.b16 %v2323_v26, %v2322_v18  ;;  %v3445_v21 = vsel %vm3431_vm1, %v2321_v12, 0  ;;  %v1145_v54 = vcombine.low %v1136_v5, %v1144_v34  ;;  %v6240_v40 = vrot.slane %v1237_v49, %v5768_v17 }
 0x1c9   : > { %5246 = vmatpush3.bf16.xpose.msra.mxu1 %v3445_v21  ;;  %v2333_v6 = vpack.i.b16 %v2293_v58, %v2243_v48  ;;  %v2335_v10 = vshrl.u32 %v2293_v58, 16  ;;  %v1250_v23 = vshrl.u32 %v1095_v30, 16  ;;  %v1944_v45 = vcombine.high %v6020_v0, %v6001_v29  ;;  %v6269_v48 = vld [vmem:[%s6977_s7] ss:$0 sm:$0xff] }
 0x1ca   : > { %5351 = vmatprep.subr.msk.bf16.mxu0 %vm3431_vm1, %v2324_v47  ;;  %v3512_v24 = vsel %vm3431_vm1, %v2324_v47, 0  ;;  %v1249_v61 = vpack.i.b16 %v1145_v54, %v1095_v30  ;;  %v1251_v56 = vshrl.u32 %v1145_v54, 16  ;;  %v6247_v51 = vrot.slane %v1187_v19, %v5768_v17  ;;  %v5239_v54 = vpop.f32.mrb[8].mxu0 }
 0x1cb   : > { %5348 = vmatprep.subr.msk.bf16.mxu1 %vm3431_vm1, %v2333_v6  ;;  %5258 = vmatpush3.bf16.xpose.msra.mxu0 %v3512_v24  ;;  %v2336_v55 = vpack.i.b16 %v2335_v10, %v2334_v4  ;;  %v6250_v20 = vrot.slane %v1229_v37, %v5768_v17  ;;  %v2305_v39 = vshrl.u32 %v1994_v43, 16  ;;  %v6254_v13 = vrot.slane %v1179_v50, %v5768_v17  ;;  %v714_v50 = vpop.f32.mrb[9].mxu0 }
 0x1cc   : > { %5249 = vmatprep.mubr.msk.bf16.mxu1 %vm3431_vm1, %v1249_v61  ;;  %v1252_v57 = vpack.i.b16 %v1251_v56, %v1250_v23  ;;  %v3448_v16 = vsel %vm3431_vm1, %v2333_v6, 0  ;;  %v2303_v29 = vpack.i.b16 %v1994_v43, %v1944_v45  ;;  %v2304_v0 = vshrl.u32 %v1944_v45, 16  ;;  %v5240_v61 = vpop.f32.mrb[10].mxu0 }
 0x1cd   : > { %5352 = vmatprep.subr.msk.bf16.mxu0 %vm3431_vm1, %v2336_v55  ;;  %v1245_v11 = vcombine.low %v6250_v20, %v6240_v40  ;;  %v1146_v14 = vcombine.high %v1136_v5, %v1144_v34  ;;  %v1195_v46 = vcombine.low %v6254_v13, %v6247_v51  ;;  %v3515_v8 = vsel %vm3431_vm1, %v2336_v55, 0 }
 0x1ce   : > { %5261 = vmatprep.mubr.msk.bf16.mxu0 %vm3431_vm1, %v1252_v57  ;;  %v2306_v41 = vpack.i.b16 %v2305_v39, %v2304_v0  ;;  %v2094_v33 = vcombine.high %v6123_v42, %v6126_v28  ;;  %v1096_v32 = vcombine.high %v1086_v59, %v1094_v60  ;;  %v2044_v12 = vcombine.high %v6110_v38, %v6095_v22  ;;  %v6993_v60 = vld [vmem:[#allocation3_spill] sm:$0xff] }
 0x1cf   : > { %v1263_v35 = vshrl.u32 %v1245_v11, 16  ;;  %v1257_v18 = vshrl.u32 %v1146_v14, 16  ;;  %v707_v26 = vadd.f32 %v5811_v25, %v6269_v48  ;;  %v1261_v63 = vpack.i.b16 %v1245_v11, %v1195_v46 }
 0x1d0   : > { %v1255_v1 = vpack.i.b16 %v1146_v14, %v1096_v32  ;;  %v1262_v42 = vshrl.u32 %v1195_v46, 16  ;;  %v2317_v28 = vshrl.u32 %v2094_v33, 16  ;;  %v1256_v49 = vshrl.u32 %v1096_v32, 16 }
 0x1d1   : > { %5248 = vmatpush3.bf16.xpose.msra.mxu1 %v3448_v16  ;;  %v699_v58 = vadd.f32 %v6269_v48, %v5815_v31  ;;  %v710_v59 = vadd.f32 %v5818_v36, %v6269_v48  ;;  %v702_v30 = vadd.f32 %v6269_v48, %v6993_v60  ;;  %v3573_v22 = vsel %vm3431_vm1, %v2303_v29, 0 }
 0x1d2   : > { %5353 = vmatprep.subr.msk.bf16.mxu1 %vm3431_vm1, %v2303_v29  ;;  %v1264_v38 = vpack.i.b16 %v1263_v35, %v1262_v42  ;;  %v2315_v25 = vpack.i.b16 %v2094_v33, %v2044_v12  ;;  %v2316_v47 = vshrl.u32 %v2044_v12, 16  ;;  %v1258_v21 = vpack.i.b16 %v1257_v18, %v1256_v49 }
 0x1d3   : > { %5260 = vmatpush3.bf16.xpose.msra.mxu0 %v3515_v8  ;;  %v6285_v5 = vpack.c.bf16 %v710_v59, %v707_v26  ;;  %v6287_v31 = vpack.c.bf16 %v702_v30, %v699_v58  ;;  %v3640_v36 = vsel %vm3431_vm1, %v2306_v41, 0  ;;  %v2194_v19 = vcombine.high %v6186_v52, %v6193_v3 }
 0x1d4   : > { %5357 = vmatprep.subr.msk.bf16.mxu0 %vm3431_vm1, %v2306_v41  ;;  %v2318_v34 = vpack.i.b16 %v2317_v28, %v2316_v47  ;;  %v2144_v6 = vcombine.high %v6159_v27, %v6162_v15  ;;  %v3576_v10 = vsel %vm3431_vm1, %v2315_v25, 0  ;;  %v2294_v52 = vcombine.high %v6213_v53, %v6217_v62  ;;  %v717_v41 = vpop.f32.mrb[11].mxu0 }
 0x1d5   : > { %2353 = vrot.lane.b32.xlu1 %v6285_v5, %s5565_s24  ;;  %2361 = vrot.lane.b32.xlu0 %v6285_v5, %s5566_s26  ;;  %v2329_v4 = vshrl.u32 %v2194_v19, 16  ;;  %v2244_v3 = vcombine.high %v6196_v9, %v6199_v44  ;;  %v723_v43 = vadd.f32 %v5239_v54, %v6269_v48  ;;  %v726_v23 = vadd.f32 %v5240_v61, %v6269_v48 }
 0x1d6   : > { %v2327_v37 = vpack.i.b16 %v2194_v19, %v2144_v6  ;;  %v2328_v24 = vshrl.u32 %v2144_v6, 16  ;;  %v3643_v27 = vsel %vm3431_vm1, %v2318_v34, 0  ;;  %v2341_v55 = vshrl.u32 %v2294_v52, 16 }
 0x1d7   : > { %v2339_v53 = vpack.i.b16 %v2294_v52, %v2244_v3  ;;  %v2340_v62 = vshrl.u32 %v2244_v3, 16  ;;  %v6319_v45 = vpack.c.bf16 %v726_v23, %v723_v43  ;;  %v1246_v39 = vcombine.high %v6250_v20, %v6240_v40 }
 0x1d8   : > { %5250 = vmatmul.mubr.msk.bf16.vlgmr.msra.gmra.mrb[8].mxu1 %vm3431_vm1, %v1261_v63  ;;  %v2330_v15 = vpack.i.b16 %v2329_v4, %v2328_v24  ;;  %v3579_v56 = vsel %vm3431_vm1, %v2327_v37, 0  ;;  %v1196_v29 = vcombine.high %v6254_v13, %v6247_v51  ;;  %v715_v8 = vadd.f32 %v6269_v48, %v714_v50 }
 0x1d9   : > { %5266 = vmatpush3.bf16.xpose.msra.mxu1 %v3573_v22  ;;  %5273 = vmatprep.mubr.msk.bf16.mxu1 %vm3431_vm1, %v1255_v1  ;;  %v2342_v44 = vpack.i.b16 %v2341_v55, %v2340_v62  ;;  %v3582_v57 = vsel %vm3431_vm1, %v2339_v53, 0  ;;  %v1269_v0 = vshrl.u32 %v1246_v39, 16  ;;  %v718_v40 = vadd.f32 %v6269_v48, %v717_v41 }
 0x1da   : > { %5262 = vmatmul.mubr.msk.bf16.vlgmr.msra.gmra.mrb[12].mxu0 %vm3431_vm1, %v1264_v38  ;;  %5354 = vmatprep.subr.msk.bf16.mxu1 %vm3431_vm1, %v2315_v25  ;;  %v3646_v9 = vsel %vm3431_vm1, %v2330_v15, 0  ;;  %v1267_v11 = vpack.i.b16 %v1246_v39, %v1196_v29  ;;  %v1268_v14 = vshrl.u32 %v1196_v29, 16  ;;  %v2379_v51 = vshrl.u32 %v6287_v31, 16 }
 0x1db   : > { %5278 = vmatpush3.bf16.xpose.msra.mxu0 %v3640_v36  ;;  %5285 = vmatprep.mubr.msk.bf16.mxu0 %vm3431_vm1, %v1258_v21  ;;  %v3649_v16 = vsel %vm3431_vm1, %v2342_v44, 0  ;;  %v6334_v20 = vpack.c.bf16 %v718_v40, %v715_v8 }
 0x1dc   : > { %5358 = vmatprep.subr.msk.bf16.mxu0 %vm3431_vm1, %v2318_v34  ;;  %2351 = vrot.lane.b32.xlu1 %v6287_v31, %s5565_s24  ;;  %v1270_v46 = vpack.i.b16 %v1269_v0, %v1268_v14 }
 0x1dd   : > { %2359 = vrot.lane.b32.xlu0 %v6287_v31, %s5566_s26 }
 0x1e0   : > { %2367 = vrot.lane.b32.xlu1 %v6287_v31, %s5564_s16 }
 0x1e1   : > { %5268 = vmatpush3.bf16.xpose.msra.mxu1 %v3576_v10 }
 0x1e2   : > { %5355 = vmatprep.subr.msk.bf16.mxu1 %vm3431_vm1, %v2327_v37 }
 0x1e3   : > { %5280 = vmatpush3.bf16.xpose.msra.mxu0 %v3643_v27 }
 0x1e4   : > { %5359 = vmatprep.subr.msk.bf16.mxu0 %vm3431_vm1, %v2330_v15 }
 0x1e9   : > { %5270 = vmatpush3.bf16.xpose.msra.mxu1 %v3579_v56 }
 0x1ea   : > { %5356 = vmatprep.subr.msk.bf16.mxu1 %vm3431_vm1, %v2339_v53 }
 0x1eb   : > { %5282 = vmatpush3.bf16.xpose.msra.mxu0 %v3646_v9 }
 0x1ec   : > { %5360 = vmatprep.subr.msk.bf16.mxu0 %vm3431_vm1, %v2342_v44 }
 0x1f1   : > { %5272 = vmatpush3.bf16.xpose.msra.mxu1 %v3582_v57 }
 0x1f3   : > { %5284 = vmatpush3.bf16.xpose.msra.mxu0 %v3649_v16 }
 0x1f8   : > { %5274 = vmatmul.mubr.msk.bf16.vlgmr.msra.gmra.mrb[12].mxu1 %vm3431_vm1, %v1267_v11 }
 0x1fa   : > { %5286 = vmatmul.mubr.msk.bf16.vlgmr.msra.gmra.mrb[16].mxu0 %vm3431_vm1, %v1270_v46 }
 0x247   : > { %v6336_v33 = vpop.permute.xlu1 %2353  ;;  %v6338_v32 = vpop.permute.xlu0 %2361 }
 0x24e   : > { %v2352_v13 = vpop.permute.xlu1 %2351 }
 0x24f   : > { %v2377_v35 = vpack.i.b16 %v2352_v13, %v6287_v31  ;;  %v2360_v12 = vpop.permute.xlu0 %2359  ;;  %v2380_v18 = vshrl.u32 %v2352_v13, 16 }
 0x250   : > { %v2387_v63 = vshrl.u32 %v2360_v12, 16 }
 0x251   : > { %v2439_v26 = vcombine.high %v2377_v35, %v5760_v2  ;;  %v2381_v1 = vpack.i.b16 %v2380_v18, %v2379_v51  ;;  %v2446_v48 = vrot.slane %v2377_v35, %v5763_v7 }
 0x252   : > { %v2368_v42 = vpop.permute.xlu1 %2367 }
 0x253   : > { %v2388_v28 = vshrl.u32 %v2368_v42, 16  ;;  %v2385_v49 = vpack.i.b16 %v2368_v42, %v2360_v12  ;;  %v2505_v58 = vcombine.high %v2381_v1, %v5760_v2  ;;  %v2453_v59 = vrot.slane %v2439_v26, %v5763_v7 }
 0x254   : > { %v2512_v38 = vrot.slane %v2381_v1, %v5763_v7 }
 0x255   : > { %v2389_v60 = vpack.i.b16 %v2388_v28, %v2387_v63  ;;  %v2454_v30 = vcombine.high %v2385_v49, %v5760_v2  ;;  %v2461_v22 = vrot.slane %v2385_v49, %v5763_v7  ;;  %v2519_v36 = vrot.slane %v2505_v58, %v5763_v7 }
 0x257   : > { %v2468_v25 = vrot.slane %v2454_v30, %v5763_v7  ;;  %v2469_v47 = vcombine.low %v2446_v48, %v2461_v22  ;;  %v2470_v21 = vcombine.high %v2446_v48, %v2461_v22  ;;  %v2520_v31 = vcombine.high %v2389_v60, %v5760_v2 }
 0x258   : > { %v2527_v34 = vrot.slane %v2389_v60, %v5763_v7 }
 0x259   : > { %v2477_v19 = vrot.slane %v2469_v47, %v5768_v17  ;;  %v2484_v6 = vrot.slane %v2470_v21, %v5768_v17  ;;  %v2485_v4 = vcombine.low %v2453_v59, %v2468_v25  ;;  %v2486_v10 = vcombine.high %v2453_v59, %v2468_v25  ;;  %v6994_v47 = vld [vmem:[#allocation2_spill] sm:$0xff] }
 0x25a   : > { %v2534_v37 = vrot.slane %v2520_v31, %v5763_v7  ;;  %v2535_v24 = vcombine.low %v2512_v38, %v2527_v34  ;;  %v2536_v27 = vcombine.high %v2512_v38, %v2527_v34  ;;  %v3719_v21 = vadd.s32 16, %v6994_v47 }
 0x25b   : > { %v2493_v15 = vrot.slane %v2485_v4, %v5768_v17  ;;  %v2500_v52 = vrot.slane %v2486_v10, %v5768_v17  ;;  %v2967_v3 = vcombine.low %v2477_v19, %v2484_v6  ;;  %v5091_v54 = vcombine.high %v2477_v19, %v2484_v6 }
 0x25c   : > { %v2543_v43 = vrot.slane %v2535_v24, %v5768_v17  ;;  %v2550_v50 = vrot.slane %v2536_v27, %v5768_v17  ;;  %v2551_v55 = vcombine.low %v2519_v36, %v2534_v37  ;;  %v2552_v61 = vcombine.high %v2519_v36, %v2534_v37 }
 0x25d   : > { %v2974_v23 = vrot.slane %v2967_v3, %v5763_v7  ;;  %v2982_v56 = vrot.slane %v5091_v54, %v5763_v7  ;;  %v2983_v53 = vcombine.low %v2493_v15, %v2500_v52  ;;  %v5092_v62 = vcombine.high %v2493_v15, %v2500_v52 }
 0x25e   : > { %v2559_v9 = vrot.slane %v2551_v55, %v5768_v17  ;;  %v2566_v44 = vrot.slane %v2552_v61, %v5768_v17  ;;  %v3017_v57 = vcombine.low %v2543_v43, %v2550_v50  ;;  %v5093_v39 = vcombine.high %v2543_v43, %v2550_v50 }
 0x25f   : > { %v2990_v16 = vrot.slane %v2983_v53, %v5763_v7  ;;  %v2998_v29 = vrot.slane %v5092_v62, %v5763_v7  ;;  %v2999_v0 = vcombine.low %v2974_v23, %v2982_v56  ;;  %v3721_v31 = vstv %s5047_s13  ;;  %s5570_s13 = smov 16  }
 0x260   : > { %v3033_v11 = vcombine.low %v2559_v9, %v2566_v44  ;;  %v5094_v14 = vcombine.high %v2559_v9, %v2566_v44  ;;  %v3024_v46 = vrot.slane %v3017_v57, %v5763_v7  ;;  %v3032_v8 = vrot.slane %v5093_v39, %v5763_v7 }
 0x261   : > { %v3006_v41 = vrot.slane %v2999_v0, %v5768_v17  ;;  %v3007_v40 = vcombine.low %v2990_v16, %v2998_v29  ;;  %v3720_v36 = vadd.s32 24, %v6994_v47  ;;  %v3718_v34 = vadd.s32 8, %v6994_v47 }
 0x262   : > { %v3040_v51 = vrot.slane %v3033_v11, %v5763_v7  ;;  %v3048_v13 = vrot.slane %v5094_v14, %v5763_v7  ;;  %v3049_v35 = vcombine.low %v3024_v46, %v3032_v8  ;;  %v6383_v19 = vadd.s32 %v3721_v31, %v3719_v21 }
 0x263   : > { %v3014_v12 = vrot.slane %v3007_v40, %v5768_v17  ;;  %v6995_v6 = vlaneseq  ;;  %v6389_v10 = vadd.s32 %v3721_v31, %v6994_v47  ;;  %v6391_v24 = vadd.s32 %v3721_v31, %v3720_v36 }
 0x264   : > { %v3056_v18 = vrot.slane %v3049_v35, %v5768_v17  ;;  %v3057_v26 = vcombine.low %v3040_v51, %v3048_v13  ;;  %v6393_v52 = vadd.s32 %v3721_v31, %v3718_v34 }
 0x265   : > { %v3015_v63 = vcombine.low %v3006_v41, %v3014_v12  ;;  %v3016_v1 = vcombine.high %v3006_v41, %v3014_v12  ;;  %v6386_v4 = vand.u32 127, %v6995_v6 }
 0x266   : > { %v3064_v42 = vrot.slane %v3057_v26, %v5768_v17 }
 0x267   : > { %v3371_v28 = vshrl.u32 %v3015_v63, 16  ;;  %v3379_v58 = vshrl.u32 %v3016_v1, 16  ;;  %vm3730_vm2 = vcmp.le.s32.totalorder %v6386_v4, %v6383_v19  ;;  %vm3728_vm4 = vcmp.le.s32.totalorder %v6386_v4, %v6389_v10 }
 0x268   : > { %v3065_v48 = vcombine.low %v3056_v18, %v3064_v42  ;;  %v3066_v49 = vcombine.high %v3056_v18, %v3064_v42  ;;  %vm3731_vm5 = vcmp.le.s32.totalorder %v6386_v4, %v6391_v24  ;;  %vm3729_vm6 = vcmp.le.s32.totalorder %v6386_v4, %v6393_v52 }
 0x26a   : > { %v3369_v59 = vpack.i.b16 %v3065_v48, %v3015_v63  ;;  %v3372_v60 = vshrl.u32 %v3065_v48, 16  ;;  %v6374_v30 = vpack.i.b16 %v3066_v49, %v3016_v1  ;;  %v3380_v22 = vshrl.u32 %v3066_v49, 16 }
 0x26c   : > { %5289 = vmatprep.subr.bf16.mxu1 %v3369_v59  ;;  %v3373_v38 = vpack.i.b16 %v3372_v60, %v3371_v28  ;;  %v6376_v25 = vpack.i.b16 %v3380_v22, %v3379_v58 }
 0x26d   : > { %5290 = vmatpush3.bf16.msra.mxu1 %v3369_v59 }
 0x26e   : > { %5301 = vmatprep.subr.bf16.mxu0 %v3373_v38 }
 0x26f   : > { %5302 = vmatpush3.bf16.msra.mxu0 %v3373_v38 }
 0x2ab   : > { %v5251_v37 = vpop.f32.mrb[8].mxu1 }
 0x2ac   : > { %v3702_v27 = vmul.f32 0.35355338, %v5251_v37  ;;  %v3484_v15 = vpop.f32.mrb[9].mxu1 }
 0x2ad   : > { %v3700_v3 = vmul.f32 0.35355338, %v3484_v15  ;;  %v5252_v54 = vpop.f32.mrb[10].mxu1  ;;  %v5263_v43 = vpop.f32.mrb[12].mxu0 }
 0x2ae   : > { %v3703_v50 = vmul.f32 0.35355338, %v5252_v54  ;;  %v3706_v55 = vmul.f32 0.35355338, %v5263_v43  ;;  %v3487_v61 = vpop.f32.mrb[11].mxu1  ;;  %v3551_v23 = vpop.f32.mrb[13].mxu0 }
 0x2af   : > { %v3701_v56 = vmul.f32 0.35355338, %v3487_v61  ;;  %v3704_v53 = vmul.f32 0.35355338, %v3551_v23  ;;  %v5264_v62 = vpop.f32.mrb[14].mxu0 }
 0x2b0   : > { %v3707_v9 = vmul.f32 0.35355338, %v5264_v62  ;;  %v3554_v44 = vpop.f32.mrb[15].mxu0  ;;  %v6404_v57 = vsel %vm3730_vm2, %v3702_v27, -1e+09 }
 0x2b1   : > { %v3705_v39 = vmul.f32 0.35355338, %v3554_v44  ;;  %v3755_v16 = vsel %vm3748_vm3, %v6404_v57, -inf  ;;  %v6413_v29 = vsel %vm3728_vm4, %v3700_v3, -1e+09 }
 0x2b2   : > { %3756 = vmax.xlane.f32.xlu1 %v3755_v16  ;;  %v3749_v0 = vsel %vm3748_vm3, %v6413_v29, -inf  ;;  %v6420_v11 = vsel %vm3730_vm2, %v3706_v55, -1e+09  ;;  %v6425_v14 = vsel %vm3731_vm5, %v3703_v50, -1e+09 }
 0x2b3   : > { %3750 = vmax.xlane.f32.xlu0 %v3749_v0  ;;  %v6430_v46 = vsel %vm3729_vm6, %v3701_v56, -1e+09  ;;  %v6435_v8 = vsel %vm3728_vm4, %v3704_v53, -1e+09  ;;  %v6440_v41 = vsel %vm3731_vm5, %v3707_v9, -1e+09 }
 0x2b4   : > { %v6445_v40 = vsel %vm3729_vm6, %v3705_v39, -1e+09  ;;  %v3767_v51 = vsel %vm3748_vm3, %v6420_v11, -inf  ;;  %v3758_v13 = vsel %vm3748_vm3, %v6425_v14, -inf  ;;  %v3752_v35 = vsel %vm3748_vm3, %v6430_v46, -inf }
 0x2b5   : > { %v3761_v12 = vsel %vm3748_vm3, %v6435_v8, -inf  ;;  %v3770_v18 = vsel %vm3748_vm3, %v6440_v41, -inf  ;;  %v3764_v26 = vsel %vm3748_vm3, %v6445_v40, -inf }
 0x2b6   : > { %3768 = vmax.xlane.f32.xlu1 %v3767_v51 }
 0x2b7   : > { %3759 = vmax.xlane.f32.xlu0 %v3758_v13 }
 0x2ba   : > { %3753 = vmax.xlane.f32.xlu1 %v3752_v35 }
 0x2bb   : > { %3762 = vmax.xlane.f32.xlu0 %v3761_v12 }
 0x2bf   : > { %3771 = vmax.xlane.f32.xlu0 %v3770_v18 }
 0x2c3   : > { %3765 = vmax.xlane.f32.xlu0 %v3764_v26 }
 0x2cb   : > { %v5275_v63 = vpop.f32.mrb[12].mxu1 }
 0x2cc   : > { %v3710_v1 = vmul.f32 0.35355338, %v5275_v63  ;;  %v3618_v42 = vpop.f32.mrb[13].mxu1 }
 0x2cd   : > { %v3708_v48 = vmul.f32 0.35355338, %v3618_v42  ;;  %v5276_v28 = vpop.f32.mrb[14].mxu1  ;;  %v5287_v49 = vpop.f32.mrb[16].mxu0 }
 0x2ce   : > { %v3711_v58 = vmul.f32 0.35355338, %v5276_v28  ;;  %v3714_v59 = vmul.f32 0.35355338, %v5287_v49  ;;  %v3621_v60 = vpop.f32.mrb[15].mxu1  ;;  %v3685_v22 = vpop.f32.mrb[17].mxu0 }
 0x2cf   : > { %v3709_v38 = vmul.f32 0.35355338, %v3621_v60  ;;  %v3712_v47 = vmul.f32 0.35355338, %v3685_v22  ;;  %v5288_v21 = vpop.f32.mrb[18].mxu0 }
 0x2d0   : > { %v3715_v31 = vmul.f32 0.35355338, %v5288_v21  ;;  %v3688_v36 = vpop.f32.mrb[19].mxu0  ;;  %v6462_v34 = vsel %vm3730_vm2, %v3710_v1, -1e+09 }
 0x2d1   : > { %v3713_v6 = vmul.f32 0.35355338, %v3688_v36  ;;  %v3779_v37 = vsel %vm3748_vm3, %v6462_v34, -inf  ;;  %v6469_v27 = vsel %vm3731_vm5, %v3711_v58, -1e+09 }
 0x2d2   : > { %3780 = vmax.xlane.f32.xlu1 %v3779_v37  ;;  %v3782_v15 = vsel %vm3748_vm3, %v6469_v27, -inf  ;;  %v6476_v3 = vsel %vm3728_vm4, %v3708_v48, -1e+09  ;;  %v6481_v54 = vsel %vm3729_vm6, %v3709_v38, -1e+09 }
 0x2d3   : > { %3783 = vmax.xlane.f32.xlu0 %v3782_v15  ;;  %v6486_v43 = vsel %vm3730_vm2, %v3714_v59, -1e+09  ;;  %v6491_v50 = vsel %vm3728_vm4, %v3712_v47, -1e+09  ;;  %v6496_v55 = vsel %vm3731_vm5, %v3715_v31, -1e+09 }
 0x2d4   : > { %v6501_v61 = vsel %vm3729_vm6, %v3713_v6, -1e+09  ;;  %v3773_v19 = vsel %vm3748_vm3, %v6476_v3, -inf  ;;  %v3776_v23 = vsel %vm3748_vm3, %v6481_v54, -inf  ;;  %v3791_v10 = vsel %vm3748_vm3, %v6486_v43, -inf }
 0x2d5   : > { %v3785_v24 = vsel %vm3748_vm3, %v6491_v50, -inf  ;;  %v3794_v4 = vsel %vm3748_vm3, %v6496_v55, -inf  ;;  %v3788_v52 = vsel %vm3748_vm3, %v6501_v61, -inf }
 0x2d6   : > { %3774 = vmax.xlane.f32.xlu1 %v3773_v19 }
 0x2d7   : > { %3777 = vmax.xlane.f32.xlu0 %v3776_v23 }
 0x2da   : > { %3792 = vmax.xlane.f32.xlu1 %v3791_v10 }
 0x2de   : > { %3786 = vmax.xlane.f32.xlu1 %v3785_v24 }
 0x2ed   : > { %2355 = vrot.lane.b32.xlu0 %v6334_v20, %s5565_s24 }
 0x2ef   : > { %2369 = vrot.lane.b32.xlu1 %v6285_v5, %s5564_s16 }
 0x2f3   : > { %2363 = vrot.lane.b32.xlu1 %v6334_v20, %s5566_s26 }
 0x2f7   : > { %2357 = vrot.lane.b32.xlu1 %v6319_v45, %s5565_s24  ;;  %s426_s24 = scalar_select %p425_p6, %s5546_s17, 1 }
 0x2fb   : > { %2373 = vrot.lane.b32.xlu1 %v6319_v45, %s5564_s16 }
 0x30c   : > { %3795 = vmax.xlane.f32.xlu0 %v3794_v4 }
 0x310   : > { %3789 = vmax.xlane.f32.xlu0 %v3788_v52 }
 0x326   : > { %2371 = vrot.lane.b32.xlu0 %v6334_v20, %s5564_s16 }
 0x32a   : > { %2365 = vrot.lane.b32.xlu0 %v6319_v45, %s5566_s26  ;;  %s5042_s26 = sshll.u32 %s7007_s18, 1 }
 0x32b   : > { %s428_s27 = sadd.s32 %s5042_s26, %s426_s24 }
 0x32c   : > { %s5043_s28 = sshll.u32 %s428_s27, 3 }
 0x32d   : > { %s430_s30 = scalar_lea.vmem %s6971_s1, %s5043_s28 }
 0x33f   : > { %v3757_v56 = vpop.xlane.xlu1 %3756 }
 0x340   : > { %v3799_v53 = vsub.f32 %v6404_v57, %v3757_v56  ;;  %v3751_v62 = vpop.xlane.xlu0 %3750 }
 0x341   : > { %v3797_v9 = vsub.f32 %v6413_v29, %v3751_v62 }
 0x342   : > { %v3817_v44 = vmul.f32 1.442695, %v3799_v53 }
 0x343   : > { %v3813_v39 = vmul.f32 1.442695, %v3797_v9  ;;  %v3769_v16 = vpop.xlane.xlu1 %3768 }
 0x344   : > { %5448 = vpow2.f32 %v3817_v44  ;;  %v3803_v0 = vsub.f32 %v6420_v11, %v3769_v16  ;;  %v3760_v51 = vpop.xlane.xlu0 %3759  ;;  %v2395_v16 = vshrl.u32 %v6285_v5, 16 }
 0x345   : > { %5450 = vpow2.f32 %v3813_v39  ;;  %v3800_v13 = vsub.f32 %v6425_v14, %v3760_v51 }
 0x346   : > { %v3825_v35 = vmul.f32 1.442695, %v3803_v0  ;;  %v2396_v0 = vshrl.u32 %v6336_v33, 16 }
 0x347   : > { %v3819_v12 = vmul.f32 1.442695, %v3800_v13  ;;  %v3754_v18 = vpop.xlane.xlu1 %3753 }
 0x348   : > { %5452 = vpow2.f32 %v3825_v35  ;;  %v3798_v26 = vsub.f32 %v6430_v46, %v3754_v18  ;;  %v3763_v57 = vpop.xlane.xlu0 %3762 }
 0x349   : > { %5454 = vpow2.f32 %v3819_v12  ;;  %v3801_v29 = vsub.f32 %v6435_v8, %v3763_v57 }
 0x34a   : > { %v3815_v63 = vmul.f32 1.442695, %v3798_v26  ;;  %v2397_v26 = vpack.i.b16 %v2396_v0, %v2395_v16 }
 0x34b   : > { %v3821_v1 = vmul.f32 1.442695, %v3801_v29 }
 0x34c   : > { %5456 = vpow2.f32 %v3815_v63  ;;  %v3772_v42 = vpop.xlane.xlu0 %3771 }
 0x34d   : > { %5458 = vpow2.f32 %v3821_v1  ;;  %v3804_v11 = vsub.f32 %v6440_v41, %v3772_v42 }
 0x34e   : > { %v6536_v48 = vpop.eup %5448 }
 0x34f   : > { %v6538_v14 = vpop.eup %5450  ;;  %v3827_v28 = vmul.f32 1.442695, %v3804_v11  ;;  %v3851_v49 = vsel %vm3748_vm3, %v6536_v48, 0.0 }
 0x350   : > { %v3766_v46 = vpop.xlane.xlu0 %3765  ;;  %3852 = vadd.xlane.f32.xlu1 %v3851_v49  ;;  %v3845_v8 = vsel %vm3748_vm3, %v6538_v14, 0.0 }
 0x351   : > { %5460 = vpow2.f32 %v3827_v28  ;;  %v3802_v58 = vsub.f32 %v6445_v40, %v3766_v46  ;;  %3846 = vadd.xlane.f32.xlu0 %v3845_v8 }
 0x352   : > { %v6545_v59 = vpop.eup %5452 }
 0x353   : > { %v6547_v41 = vpop.eup %5454  ;;  %v3823_v60 = vmul.f32 1.442695, %v3802_v58  ;;  %v3863_v22 = vsel %vm3748_vm3, %v6545_v59, 0.0 }
 0x354   : > { %3864 = vadd.xlane.f32.xlu1 %v3863_v22  ;;  %v3854_v38 = vsel %vm3748_vm3, %v6547_v41, 0.0 }
 0x355   : > { %5462 = vpow2.f32 %v3823_v60  ;;  %3855 = vadd.xlane.f32.xlu0 %v3854_v38 }
 0x356   : > { %v6553_v47 = vpop.eup %5456 }
 0x357   : > { %v6555_v21 = vpop.eup %5458  ;;  %v3848_v40 = vsel %vm3748_vm3, %v6553_v47, 0.0 }
 0x358   : > { %3849 = vadd.xlane.f32.xlu1 %v3848_v40  ;;  %v3857_v31 = vsel %vm3748_vm3, %v6555_v21, 0.0 }
 0x359   : > { %3858 = vadd.xlane.f32.xlu0 %v3857_v31  ;;  %v2644_v31 = vrot.slane %v2397_v26, %v5763_v7 }
 0x35b   : > { %v6561_v36 = vpop.eup %5460 }
 0x35c   : > { %v3866_v6 = vsel %vm3748_vm3, %v6561_v36, 0.0 }
 0x35d   : > { %3867 = vadd.xlane.f32.xlu0 %v3866_v6 }
 0x35f   : > { %v6565_v37 = vpop.eup %5462  ;;  %v3781_v15 = vpop.xlane.xlu1 %3780 }
 0x360   : > { %v3807_v19 = vsub.f32 %v6462_v34, %v3781_v15  ;;  %v3784_v23 = vpop.xlane.xlu0 %3783  ;;  %v3860_v10 = vsel %vm3748_vm3, %v6565_v37, 0.0 }
 0x361   : > { %v3808_v24 = vsub.f32 %v6469_v27, %v3784_v23  ;;  %3861 = vadd.xlane.f32.xlu0 %v3860_v10  ;;  %v2393_v27 = vpack.i.b16 %v6336_v33, %v6285_v5 }
 0x362   : > { %v3833_v4 = vmul.f32 1.442695, %v3807_v19 }
 0x363   : > { %v3835_v52 = vmul.f32 1.442695, %v3808_v24  ;;  %v3775_v56 = vpop.xlane.xlu1 %3774  ;;  %v2571_v57 = vcombine.high %v2393_v27, %v5760_v2  ;;  %v2578_v42 = vrot.slane %v2393_v27, %v5763_v7 }
 0x364   : > { %5464 = vpow2.f32 %v3833_v4  ;;  %v3805_v53 = vsub.f32 %v6476_v3, %v3775_v56  ;;  %v3778_v62 = vpop.xlane.xlu0 %3777 }
 0x365   : > { %5466 = vpow2.f32 %v3835_v52  ;;  %v3806_v9 = vsub.f32 %v6481_v54, %v3778_v62  ;;  %v2403_v54 = vshrl.u32 %v6338_v32, 16  ;;  %v2585_v8 = vrot.slane %v2571_v57, %v5763_v7 }
 0x366   : > { %v3829_v44 = vmul.f32 1.442695, %v3805_v53 }
 0x367   : > { %v3831_v39 = vmul.f32 1.442695, %v3806_v9  ;;  %v3793_v34 = vpop.xlane.xlu1 %3792 }
 0x368   : > { %5468 = vpow2.f32 %v3829_v44  ;;  %v3811_v51 = vsub.f32 %v6486_v43, %v3793_v34 }
 0x369   : > { %5470 = vpow2.f32 %v3831_v39 }
 0x36a   : > { %v3841_v29 = vmul.f32 1.442695, %v3811_v51 }
 0x36b   : > { %v3787_v13 = vpop.xlane.xlu1 %3786 }
 0x36c   : > { %v3809_v3 = vsub.f32 %v6491_v50, %v3787_v13 }
 0x36e   : > { %v6579_v35 = vpop.eup %5464  ;;  %v3837_v12 = vmul.f32 1.442695, %v3809_v3 }
 0x36f   : > { %v6582_v18 = vpop.eup %5466  ;;  %v2370_v63 = vpop.permute.xlu1 %2369  ;;  %v3875_v5 = vsel %vm3748_vm3, %v6579_v35, 0.0 }
 0x370   : > { %5472 = vpow2.f32 %v3837_v12  ;;  %v2401_v33 = vpack.i.b16 %v2370_v63, %v6338_v32  ;;  %v2404_v43 = vshrl.u32 %v2370_v63, 16  ;;  %3876 = vadd.xlane.f32.xlu1 %v3875_v5  ;;  %v3878_v50 = vsel %vm3748_vm3, %v6582_v18, 0.0 }
 0x371   : > { %3879 = vadd.xlane.f32.xlu0 %v3878_v50  ;;  %v2637_v32 = vcombine.high %v2397_v26, %v5760_v2  ;;  %5474 = vpow2.f32 %v3841_v29 }
 0x372   : > { %v6590_v1 = vpop.eup %5468  ;;  %v2405_v11 = vpack.i.b16 %v2404_v43, %v2403_v54  ;;  %v2586_v28 = vcombine.high %v2401_v33, %v5760_v2  ;;  %v2593_v49 = vrot.slane %v2401_v33, %v5763_v7 }
 0x373   : > { %v6595_v46 = vpop.eup %5470  ;;  %v3869_v58 = vsel %vm3748_vm3, %v6590_v1, 0.0  ;;  %v2651_v4 = vrot.slane %v2637_v32, %v5763_v7 }
 0x374   : > { %v2600_v60 = vrot.slane %v2586_v28, %v5763_v7  ;;  %v2601_v22 = vcombine.low %v2578_v42, %v2593_v49  ;;  %v2602_v38 = vcombine.high %v2578_v42, %v2593_v49  ;;  %v2652_v40 = vcombine.high %v2405_v11, %v5760_v2  ;;  %3870 = vadd.xlane.f32.xlu1 %v3869_v58 }
 0x375   : > { %v2659_v6 = vrot.slane %v2405_v11, %v5763_v7  ;;  %v3872_v15 = vsel %vm3748_vm3, %v6595_v46, 0.0 }
 0x376   : > { %v2609_v19 = vrot.slane %v2601_v22, %v5768_v17  ;;  %v2616_v23 = vrot.slane %v2602_v38, %v5768_v17  ;;  %v2617_v10 = vcombine.low %v2585_v8, %v2600_v60  ;;  %v2618_v24 = vcombine.high %v2585_v8, %v2600_v60  ;;  %3873 = vadd.xlane.f32.xlu0 %v3872_v15 }
 0x377   : > { %v2666_v52 = vrot.slane %v2652_v40, %v5763_v7  ;;  %v2667_v56 = vcombine.low %v2644_v31, %v2659_v6  ;;  %v2668_v53 = vcombine.high %v2644_v31, %v2659_v6 }
 0x378   : > { %v2625_v62 = vrot.slane %v2617_v10, %v5768_v17  ;;  %v2632_v9 = vrot.slane %v2618_v24, %v5768_v17  ;;  %v3067_v44 = vcombine.low %v2609_v19, %v2616_v23  ;;  %v5095_v39 = vcombine.high %v2609_v19, %v2616_v23 }
 0x379   : > { %v2675_v34 = vrot.slane %v2667_v56, %v5768_v17  ;;  %v2682_v16 = vrot.slane %v2668_v53, %v5768_v17  ;;  %v2683_v27 = vcombine.low %v2651_v4, %v2666_v52  ;;  %v2684_v0 = vcombine.high %v2651_v4, %v2666_v52 }
 0x37a   : > { %v6615_v51 = vpop.eup %5472  ;;  %v3074_v13 = vrot.slane %v3067_v44, %v5763_v7  ;;  %v3082_v3 = vrot.slane %v5095_v39, %v5763_v7  ;;  %v3083_v54 = vcombine.low %v2625_v62, %v2632_v9  ;;  %v5096_v12 = vcombine.high %v2625_v62, %v2632_v9 }
 0x37b   : > { %v2691_v26 = vrot.slane %v2683_v27, %v5768_v17  ;;  %v2698_v57 = vrot.slane %v2684_v0, %v5768_v17  ;;  %v3117_v29 = vcombine.low %v2675_v34, %v2682_v16  ;;  %v5097_v63 = vcombine.high %v2675_v34, %v2682_v16  ;;  %v6623_v33 = vpop.eup %5474  ;;  %v2364_v16 = vpop.permute.xlu1 %2363 }
 0x37c   : > { %v3881_v5 = vsel %vm3748_vm3, %v6615_v51, 0.0  ;;  %v3090_v42 = vrot.slane %v3083_v54, %v5763_v7  ;;  %v3098_v11 = vrot.slane %v5096_v12, %v5763_v7  ;;  %v3099_v28 = vcombine.low %v3074_v13, %v3082_v3  ;;  %v2356_v27 = vpop.permute.xlu0 %2355 }
 0x37d   : > { %v3133_v43 = vcombine.low %v2691_v26, %v2698_v57  ;;  %v5098_v50 = vcombine.high %v2691_v26, %v2698_v57  ;;  %3882 = vadd.xlane.f32.xlu1 %v3881_v5  ;;  %v3124_v8 = vrot.slane %v3117_v29, %v5763_v7  ;;  %v3132_v32 = vrot.slane %v5097_v63, %v5763_v7 }
 0x37e   : > { %v3107_v49 = vcombine.low %v3090_v42, %v3098_v11  ;;  %v3887_v60 = vsel %vm3748_vm3, %v6623_v33, 0.0  ;;  %v3106_v22 = vrot.slane %v3099_v28, %v5768_v17  ;;  %v2412_v0 = vshrl.u32 %v2356_v27, 16 }
 0x37f   : > { %v3140_v58 = vrot.slane %v3133_v43, %v5763_v7  ;;  %v3148_v40 = vrot.slane %v5098_v50, %v5763_v7  ;;  %v3149_v31 = vcombine.low %v3124_v8, %v3132_v32  ;;  %v2358_v13 = vpop.permute.xlu1 %2357  ;;  %v2411_v54 = vshrl.u32 %v6334_v20, 16 }
 0x380   : > { %v3114_v38 = vrot.slane %v3107_v49, %v5768_v17  ;;  %v2409_v26 = vpack.i.b16 %v2356_v27, %v6334_v20  ;;  %v2428_v57 = vshrl.u32 %v2358_v13, 16  ;;  %v2427_v63 = vshrl.u32 %v6319_v45, 16 }
 0x381   : > { %3888 = vadd.xlane.f32.xlu1 %v3887_v60  ;;  %v3157_v6 = vcombine.low %v3140_v58, %v3148_v40  ;;  %v3156_v23 = vrot.slane %v3149_v31, %v5768_v17  ;;  %v2413_v29 = vpack.i.b16 %v2412_v0, %v2411_v54  ;;  %v2425_v5 = vpack.i.b16 %v2358_v13, %v6319_v45 }
 0x382   : > { %v3116_v15 = vcombine.high %v3106_v22, %v3114_v38  ;;  %v3115_v19 = vcombine.low %v3106_v22, %v3114_v38  ;;  %v2703_v11 = vcombine.high %v2409_v26, %v5760_v2  ;;  %v2429_v28 = vpack.i.b16 %v2428_v57, %v2427_v63 }
 0x383   : > { %v3164_v10 = vrot.slane %v3157_v6, %v5768_v17  ;;  %v2769_v49 = vcombine.high %v2413_v29, %v5760_v2  ;;  %v2419_v32 = vshrl.u32 %v2364_v16, 16  ;;  %v2374_v58 = vpop.permute.xlu1 %2373  ;;  %v2710_v45 = vrot.slane %v2409_v26, %v5763_v7 }
 0x384   : > { %v3387_v52 = vshrl.u32 %v3115_v19, 16  ;;  %v3395_v56 = vshrl.u32 %v3116_v15, 16  ;;  %v2717_v38 = vrot.slane %v2703_v11, %v5763_v7  ;;  %v2901_v40 = vcombine.high %v2429_v28, %v5760_v2 }
 0x385   : > { %v3165_v24 = vcombine.low %v3156_v23, %v3164_v10  ;;  %v3166_v4 = vcombine.high %v3156_v23, %v3164_v10  ;;  %v2783_v31 = vrot.slane %v2769_v49, %v5763_v7  ;;  %v2842_v23 = vrot.slane %v2425_v5, %v5763_v7 }
 0x387   : > { %v3385_v53 = vpack.i.b16 %v3165_v24, %v3115_v19  ;;  %v3388_v62 = vshrl.u32 %v3165_v24, 16  ;;  %v6637_v9 = vpack.i.b16 %v3166_v4, %v3116_v15  ;;  %v3396_v44 = vshrl.u32 %v3166_v4, 16 }
 0x388   : > { %v2908_v24 = vrot.slane %v2429_v28, %v5763_v7  ;;  %v2436_v4 = vshrl.u32 %v2374_v58, 16 }
 0x389   : > { %5291 = vmatprep.subr.bf16.mxu1 %v3385_v53  ;;  %v3389_v39 = vpack.i.b16 %v3388_v62, %v3387_v52  ;;  %v6639_v34 = vpack.i.b16 %v3396_v44, %v3395_v56 }
 0x38a   : > { %5292 = vmatpush3.bf16.msra.mxu1 %v3385_v53 }
 0x38b   : > { %5303 = vmatprep.subr.bf16.mxu0 %v3389_v39 }
 0x38c   : > { %5304 = vmatpush3.bf16.msra.mxu0 %v3389_v39  ;;  %v2915_v39 = vrot.slane %v2901_v40, %v5763_v7 }
 0x399   : > { %v3796_v3 = vpop.xlane.xlu0 %3795 }
 0x39a   : > { %v3812_v12 = vsub.f32 %v6496_v55, %v3796_v3  ;;  %v2835_v55 = vcombine.high %v2425_v5, %v5760_v2 }
 0x39c   : > { %v3843_v43 = vmul.f32 1.442695, %v3812_v12  ;;  %v6659_v10 = vrot.slane %v2835_v55, %v5763_v7 }
 0x39d   : > { %v3790_v50 = vpop.xlane.xlu0 %3789 }
 0x39e   : > { %v3810_v42 = vsub.f32 %v6501_v61, %v3790_v50  ;;  %5476 = vpow2.f32 %v3843_v43  ;;  %v2776_v61 = vrot.slane %v2413_v29, %v5763_v7 }
 0x3a0   : > { %v3839_v8 = vmul.f32 1.442695, %v3810_v42 }
 0x3a1   : > { %v2372_v20 = vpop.permute.xlu0 %2371 }
 0x3a2   : > { %5478 = vpow2.f32 %v3839_v8  ;;  %v2417_v60 = vpack.i.b16 %v2372_v20, %v2364_v16  ;;  %v2420_v22 = vshrl.u32 %v2372_v20, 16 }
 0x3a4   : > { %v2421_v6 = vpack.i.b16 %v2420_v22, %v2419_v32  ;;  %v2718_v15 = vcombine.high %v2417_v60, %v5760_v2  ;;  %v2725_v19 = vrot.slane %v2417_v60, %v5763_v7 }
 0x3a5   : > { %v2366_v52 = vpop.permute.xlu0 %2365 }
 0x3a6   : > { %v2732_v56 = vrot.slane %v2718_v15, %v5763_v7  ;;  %v2733_v53 = vcombine.low %v2710_v45, %v2725_v19  ;;  %v2734_v62 = vcombine.high %v2710_v45, %v2725_v19  ;;  %v2784_v44 = vcombine.high %v2421_v6, %v5760_v2 }
 0x3a7   : > { %v2791_v16 = vrot.slane %v2421_v6, %v5763_v7  ;;  %v2433_v27 = vpack.i.b16 %v2374_v58, %v2366_v52  ;;  %v2435_v0 = vshrl.u32 %v2366_v52, 16 }
 0x3a8   : > { %v2741_v13 = vrot.slane %v2733_v53, %v5768_v17  ;;  %v2748_v3 = vrot.slane %v2734_v62, %v5768_v17  ;;  %v2749_v54 = vcombine.low %v2717_v38, %v2732_v56  ;;  %v2750_v12 = vcombine.high %v2717_v38, %v2732_v56  ;;  %v6671_v11 = vpop.eup %5476 }
 0x3a9   : > { %v2798_v26 = vrot.slane %v2784_v44, %v5763_v7  ;;  %v2799_v57 = vcombine.low %v2776_v61, %v2791_v16  ;;  %v2800_v29 = vcombine.high %v2776_v61, %v2791_v16  ;;  %v2437_v63 = vpack.i.b16 %v2436_v4, %v2435_v0 }
 0x3aa   : > { %v2757_v5 = vrot.slane %v2749_v54, %v5768_v17  ;;  %v2764_v43 = vrot.slane %v2750_v12, %v5768_v17  ;;  %v3167_v50 = vcombine.low %v2741_v13, %v2748_v3  ;;  %v5099_v42 = vcombine.high %v2741_v13, %v2748_v3 }
 0x3ab   : > { %v2807_v28 = vrot.slane %v2799_v57, %v5768_v17  ;;  %v2814_v49 = vrot.slane %v2800_v29, %v5768_v17  ;;  %v2815_v8 = vcombine.low %v2783_v31, %v2798_v26  ;;  %v2816_v55 = vcombine.high %v2783_v31, %v2798_v26 }
 0x3ac   : > { %v6675_v20 = vpop.eup %5478  ;;  %v3174_v32 = vrot.slane %v3167_v50, %v5763_v7  ;;  %v3182_v58 = vrot.slane %v5099_v42, %v5763_v7  ;;  %v3183_v60 = vcombine.low %v2757_v5, %v2764_v43  ;;  %v5100_v22 = vcombine.high %v2757_v5, %v2764_v43 }
 0x3ad   : > { %v2823_v45 = vrot.slane %v2815_v8, %v5768_v17  ;;  %v2830_v38 = vrot.slane %v2816_v55, %v5768_v17  ;;  %v3217_v61 = vcombine.low %v2807_v28, %v2814_v49  ;;  %v5101_v40 = vcombine.high %v2807_v28, %v2814_v49 }
 0x3ae   : > { %v2850_v6 = vcombine.high %v2433_v27, %v5760_v2  ;;  %v2857_v15 = vrot.slane %v2433_v27, %v5763_v7  ;;  %v2916_v31 = vcombine.high %v2437_v63, %v5760_v2  ;;  %v2923_v19 = vrot.slane %v2437_v63, %v5763_v7 }
 0x3af   : > { %v3233_v4 = vcombine.low %v2823_v45, %v2830_v38  ;;  %v5102_v52 = vcombine.high %v2823_v45, %v2830_v38  ;;  %v3884_v56 = vsel %vm3748_vm3, %v6675_v20, 0.0  ;;  %v3890_v53 = vsel %vm3748_vm3, %v6671_v11, 0.0 }
 0x3b0   : > { %v2864_v62 = vrot.slane %v2850_v6, %v5763_v7  ;;  %v2865_v44 = vcombine.low %v2842_v23, %v2857_v15  ;;  %v2866_v16 = vcombine.high %v2842_v23, %v2857_v15  ;;  %v2930_v0 = vrot.slane %v2916_v31, %v5763_v7  ;;  %3885 = vadd.xlane.f32.xlu0 %v3884_v56 }
 0x3b1   : > { %v2931_v27 = vcombine.low %v2908_v24, %v2923_v19  ;;  %v2932_v13 = vcombine.high %v2908_v24, %v2923_v19  ;;  %v3190_v2 = vrot.slane %v3183_v60, %v5763_v7  ;;  %v3198_v3 = vrot.slane %v5100_v22, %v5763_v7 }
 0x3b2   : > { %v2873_v54 = vrot.slane %v2865_v44, %v5768_v17  ;;  %v2880_v12 = vrot.slane %v2866_v16, %v5768_v17  ;;  %v2881_v26 = vcombine.low %v6659_v10, %v2864_v62  ;;  %v2882_v57 = vcombine.high %v6659_v10, %v2864_v62 }
 0x3b3   : > { %v2939_v29 = vrot.slane %v2931_v27, %v5768_v17  ;;  %v2946_v23 = vrot.slane %v2932_v13, %v5768_v17  ;;  %v2947_v63 = vcombine.low %v2915_v39, %v2930_v0  ;;  %v2948_v5 = vcombine.high %v2915_v39, %v2930_v0 }
 0x3b4   : > { %v2889_v24 = vrot.slane %v2881_v26, %v5768_v17  ;;  %v2896_v43 = vrot.slane %v2882_v57, %v5768_v17  ;;  %v3267_v50 = vcombine.low %v2873_v54, %v2880_v12  ;;  %v5103_v42 = vcombine.high %v2873_v54, %v2880_v12  ;;  %3891 = vadd.xlane.f32.xlu0 %v3890_v53 }
 0x3b5   : > { %v2955_v28 = vrot.slane %v2947_v63, %v5768_v17  ;;  %v2962_v49 = vrot.slane %v2948_v5, %v5768_v17  ;;  %v3317_v8 = vcombine.low %v2939_v29, %v2946_v23  ;;  %v5105_v55 = vcombine.high %v2939_v29, %v2946_v23 }
 0x3b6   : > { %v3274_v10 = vrot.slane %v3267_v50, %v5763_v7  ;;  %v3282_v60 = vrot.slane %v5103_v42, %v5763_v7  ;;  %v3283_v22 = vcombine.low %v2889_v24, %v2896_v43  ;;  %v5104_v45 = vcombine.high %v2889_v24, %v2896_v43 }
 0x3b7   : > { %v3333_v39 = vcombine.low %v2955_v28, %v2962_v49  ;;  %v5106_v38 = vcombine.high %v2955_v28, %v2962_v49  ;;  %v3199_v6 = vcombine.low %v3174_v32, %v3182_v58  ;;  %v3207_v15 = vcombine.low %v3190_v2, %v3198_v3 }
 0x3b8   : > { %v3224_v31 = vrot.slane %v3217_v61, %v5763_v7  ;;  %v3232_v19 = vrot.slane %v5101_v40, %v5763_v7  ;;  %v3240_v56 = vrot.slane %v3233_v4, %v5763_v7  ;;  %v3248_v53 = vrot.slane %v5102_v52, %v5763_v7 }
 0x3b9   : > { %v6710_v62 = vrot.slane %v3199_v6, %v5768_v17  ;;  %v6713_v44 = vrot.slane %v3207_v15, %v5768_v17  ;;  %v3290_v16 = vrot.slane %v3283_v22, %v5763_v7  ;;  %v3298_v0 = vrot.slane %v5104_v45, %v5763_v7 }
 0x3ba   : > { %v3249_v32 = vcombine.low %v3224_v31, %v3232_v19  ;;  %v3257_v58 = vcombine.low %v3240_v56, %v3248_v53  ;;  %v3299_v27 = vcombine.low %v3274_v10, %v3282_v60  ;;  %v3324_v61 = vrot.slane %v3317_v8, %v5763_v7 }
 0x3bb   : > { %v3215_v40 = vcombine.low %v6710_v62, %v6713_v44  ;;  %v3307_v4 = vcombine.low %v3290_v16, %v3298_v0  ;;  %v3332_v52 = vrot.slane %v5105_v55, %v5763_v7  ;;  %v3340_v13 = vrot.slane %v3333_v39, %v5763_v7 }
 0x3bc   : > { %v3256_v2 = vrot.slane %v3249_v32, %v5768_v17  ;;  %v3264_v3 = vrot.slane %v3257_v58, %v5768_v17  ;;  %v3348_v54 = vrot.slane %v5106_v38, %v5763_v7  ;;  %v6726_v12 = vrot.slane %v3299_v27, %v5768_v17 }
 0x3bd   : > { %v6729_v26 = vrot.slane %v3307_v4, %v5768_v17  ;;  %v3349_v57 = vcombine.low %v3324_v61, %v3332_v52  ;;  %v3403_v63 = vshrl.u32 %v3215_v40, 16 }
 0x3be   : > { %v3265_v29 = vcombine.low %v3256_v2, %v3264_v3  ;;  %v3357_v23 = vcombine.low %v3340_v13, %v3348_v54  ;;  %v3266_v13 = vcombine.high %v3256_v2, %v3264_v3 }
 0x3bf   : > { %v3315_v5 = vcombine.low %v6726_v12, %v6729_v26  ;;  %v3356_v50 = vrot.slane %v3349_v57, %v5768_v17  ;;  %v3316_v3 = vcombine.high %v6726_v12, %v6729_v26 }
 0x3c0   : > { %v3401_v24 = vpack.i.b16 %v3265_v29, %v3215_v40  ;;  %v3404_v43 = vshrl.u32 %v3265_v29, 16  ;;  %v3364_v42 = vrot.slane %v3357_v23, %v5768_v17 }
 0x3c1   : > { %v3419_v55 = vshrl.u32 %v3315_v5, 16 }
 0x3c2   : > { %5293 = vmatprep.subr.bf16.mxu1 %v3401_v24  ;;  %v3405_v28 = vpack.i.b16 %v3404_v43, %v3403_v63  ;;  %v3365_v49 = vcombine.low %v3356_v50, %v3364_v42  ;;  %v3366_v63 = vcombine.high %v3356_v50, %v3364_v42 }
 0x3c3   : > { %5294 = vmatpush3.bf16.msra.mxu1 %v3401_v24  ;;  %v3427_v24 = vshrl.u32 %v3316_v3, 16 }
 0x3c4   : > { %5305 = vmatprep.subr.bf16.mxu0 %v3405_v28  ;;  %v3417_v8 = vpack.i.b16 %v3365_v49, %v3315_v5  ;;  %v3420_v10 = vshrl.u32 %v3365_v49, 16  ;;  %v3428_v26 = vshrl.u32 %v3366_v63, 16 }
 0x3c5   : > { %5306 = vmatpush3.bf16.msra.mxu0 %v3405_v28 }
 0x3c6   : > { %5295 = vmatprep.subr.bf16.mxu1 %v3417_v8  ;;  %v3421_v60 = vpack.i.b16 %v3420_v10, %v3419_v55  ;;  %v3429_v43 = vpack.i.b16 %v3428_v26, %v3427_v24 }
 0x3c7   : > { %5296 = vmatpush3.bf16.msra.mxu1 %v3417_v8 }
 0x3c8   : > { %5307 = vmatprep.subr.bf16.mxu0 %v3421_v60  ;;  %5313 = vmatprep.subr.bf16.mxu1 %v6374_v30 }
 0x3c9   : > { %5308 = vmatpush3.bf16.msra.mxu0 %v3421_v60 }
 0x3ca   : > { %5325 = vmatprep.subr.bf16.mxu0 %v6376_v25 }
 0x3dd   : > { %v3853_v22 = vpop.xlane.xlu1 %3852 }
 0x3de   : > { %v3847_v45 = vpop.xlane.xlu0 %3846 }
 0x3e1   : > { %v3865_v39 = vpop.xlane.xlu1 %3864 }
 0x3e2   : > { %v3856_v38 = vpop.xlane.xlu0 %3855 }
 0x3e3   : > { %5480 = vrcp.f32 %v3856_v38 }
 0x3e4   : > { %5482 = vrcp.f32 %v3847_v45 }
 0x3e5   : > { %5484 = vrcp.f32 %v3853_v22  ;;  %v3850_v6 = vpop.xlane.xlu1 %3849 }
 0x3e6   : > { %5486 = vrcp.f32 %v3850_v6  ;;  %v3859_v15 = vpop.xlane.xlu0 %3858 }
 0x3ea   : > { %v3868_v31 = vpop.xlane.xlu0 %3867 }
 0x3eb   : > { %5488 = vrcp.f32 %v3868_v31 }
 0x3ec   : > { %5490 = vrcp.f32 %v3859_v15 }
 0x3ed   : > { %v5481_v19 = vpop.eup %5480  ;;  %5492 = vrcp.f32 %v3865_v39 }
 0x3ee   : > { %v5483_v56 = vpop.eup %5482  ;;  %v3862_v53 = vpop.xlane.xlu0 %3861  ;;  %v3912_v32 = vmul.f32 %v5481_v19, %v6547_v41 }
 0x3ef   : > { %v5485_v16 = vpop.eup %5484  ;;  %5494 = vrcp.f32 %v3862_v53  ;;  %v3909_v58 = vmul.f32 %v5483_v56, %v6538_v14  ;;  %v3216_v14 = vcombine.high %v6710_v62, %v6713_v44 }
 0x3f0   : > { %v5487_v0 = vpop.eup %5486  ;;  %v3911_v61 = vmul.f32 %v5485_v16, %v6536_v48 }
 0x3f1   : > { %v3910_v27 = vmul.f32 %v5487_v0, %v6553_v47  ;;  %v3409_v47 = vpack.i.b16 %v3266_v13, %v3216_v14 }
 0x3f2   : > { %v3926_v4 = vpack.c.bf16 %v3912_v32, %v3911_v61 }
 0x3f3   : > { %v3925_v40 = vpack.c.bf16 %v3910_v27, %v3909_v58 }
 0x3f5   : > { %5297 = vmatprep.mubr.msk.bf16.mxu1 %vm3748_vm3, %v3925_v40  ;;  %v5489_v52 = vpop.eup %5488 }
 0x3f6   : > { %5298 = vmatmul.mubr.msk.bf16.vlgmr.msra.gmra.mrb[16].mxu1 %vm3748_vm3, %v3926_v4  ;;  %v5491_v54 = vpop.eup %5490  ;;  %v3916_v48 = vmul.f32 %v5489_v52, %v6561_v36  ;;  %v3425_v36 = vpack.i.b16 %v3366_v63, %v3316_v3 }
 0x3f7   : > { %5314 = vmatpush3.bf16.msra.mxu1 %v6374_v30  ;;  %v5493_v57 = vpop.eup %5492  ;;  %v3913_v29 = vmul.f32 %v5491_v54, %v6555_v21  ;;  %v3412_v21 = vshrl.u32 %v3266_v13, 16 }
 0x3f8   : > { %5315 = vmatprep.subr.bf16.mxu1 %v6637_v9  ;;  %v3915_v2 = vmul.f32 %v5493_v57, %v6545_v59 }
 0x3f9   : > { %v5495_v41 = vpop.eup %5494 }
 0x3fa   : > { %v3914_v23 = vmul.f32 %v5495_v41, %v6565_v37  ;;  %v3928_v62 = vpack.c.bf16 %v3916_v48, %v3915_v2  ;;  %v3411_v37 = vshrl.u32 %v3216_v14, 16 }
 0x3fb   : > { %5316 = vmatpush3.bf16.msra.mxu1 %v6637_v9 }
 0x3fc   : > { %5317 = vmatprep.subr.bf16.mxu1 %v3409_v47  ;;  %v3927_v30 = vpack.c.bf16 %v3914_v23, %v3913_v29  ;;  %v3413_v12 = vpack.i.b16 %v3412_v21, %v3411_v37 }
 0x3fd   : > { %v3877_v5 = vpop.xlane.xlu1 %3876 }
 0x3fe   : > { %5309 = vmatprep.mubr.msk.bf16.mxu0 %vm3748_vm3, %v3927_v30  ;;  %v3880_v44 = vpop.xlane.xlu0 %3879 }
 0x3ff   : > { %5318 = vmatpush3.bf16.msra.mxu1 %v3409_v47  ;;  %5310 = vmatmul.mubr.msk.bf16.vlgmr.msra.gmra.mrb[20].mxu0 %vm3748_vm3, %v3928_v62  ;;  %5496 = vrcp.f32 %v3880_v44 }
 0x400   : > { %5319 = vmatprep.subr.bf16.mxu1 %v3425_v36  ;;  %5326 = vmatpush3.bf16.msra.mxu0 %v6376_v25 }
 0x401   : > { %5327 = vmatprep.subr.bf16.mxu0 %v6639_v34  ;;  %v3871_v59 = vpop.xlane.xlu1 %3870 }
 0x402   : > { %5498 = vrcp.f32 %v3871_v59 }
 0x403   : > { %5500 = vrcp.f32 %v3877_v5  ;;  %5320 = vmatpush3.bf16.msra.mxu1 %v3425_v36  ;;  %v3874_v9 = vpop.xlane.xlu0 %3873 }
 0x404   : > { %5328 = vmatpush3.bf16.msra.mxu0 %v6639_v34  ;;  %5502 = vrcp.f32 %v3874_v9 }
 0x405   : > { %5329 = vmatprep.subr.bf16.mxu0 %v3413_v12 }
 0x408   : > { %5330 = vmatpush3.bf16.msra.mxu0 %v3413_v12 }
 0x409   : > { %5331 = vmatprep.subr.bf16.mxu0 %v3429_v43  ;;  %v5497_v25 = vpop.eup %5496 }
 0x40a   : > { %v3920_v49 = vmul.f32 %v5497_v25, %v6582_v18  ;;  %v3883_v22 = vpop.xlane.xlu1 %3882 }
 0x40b   : > { %5504 = vrcp.f32 %v3883_v22 }
 0x40c   : > { %v5499_v50 = vpop.eup %5498  ;;  %5332 = vmatpush3.bf16.msra.mxu0 %v3429_v43 }
 0x40d   : > { %v5501_v42 = vpop.eup %5500  ;;  %v3917_v8 = vmul.f32 %v5499_v50, %v6590_v1 }
 0x40e   : > { %v5503_v28 = vpop.eup %5502  ;;  %v3919_v10 = vmul.f32 %v5501_v42, %v6579_v35  ;;  %v3889_v45 = vpop.xlane.xlu1 %3888 }
 0x40f   : > { %v3918_v55 = vmul.f32 %v5503_v28, %v6595_v46 }
 0x410   : > { %v3930_v60 = vpack.c.bf16 %v3920_v49, %v3919_v10 }
 0x411   : > { %v3929_v34 = vpack.c.bf16 %v3918_v55, %v3917_v8 }
 0x413   : > { %5321 = vmatprep.mubr.msk.bf16.mxu1 %vm3748_vm3, %v3929_v34 }
 0x414   : > { %5322 = vmatmul.mubr.msk.bf16.vlgmr.msra.gmra.mrb[20].mxu1 %vm3748_vm3, %v3930_v60 }
 0x415   : > { %v5505_v18 = vpop.eup %5504 }
 0x416   : > { %v3921_v46 = vmul.f32 %v5505_v18, %v6615_v51 }
 0x43d   : > { %v3886_v39 = vpop.xlane.xlu0 %3885 }
 0x43e   : > { %5506 = vrcp.f32 %v3886_v39 }
 0x43f   : > { %5508 = vrcp.f32 %v3889_v45 }
 0x441   : > { %v3892_v38 = vpop.xlane.xlu0 %3891 }
 0x442   : > { %5510 = vrcp.f32 %v3892_v38 }
 0x448   : > { %v5507_v1 = vpop.eup %5506 }
 0x449   : > { %v3922_v35 = vmul.f32 %v5507_v1, %v6675_v20  ;;  %v5509_v6 = vpop.eup %5508 }
 0x44a   : > { %v3923_v19 = vmul.f32 %v5509_v6, %v6623_v33 }
 0x44b   : > { %v3931_v15 = vpack.c.bf16 %v3922_v35, %v3921_v46 }
 0x44c   : > { %v5511_v31 = vpop.eup %5510 }
 0x44d   : > { %v3924_v56 = vmul.f32 %v5511_v31, %v6671_v11  ;;  %5333 = vmatprep.mubr.msk.bf16.mxu0 %vm3748_vm3, %v3931_v15 }
 0x44f   : > { %v3932_v53 = vpack.c.bf16 %v3924_v56, %v3923_v19 }
 0x451   : > { %5334 = vmatmul.mubr.msk.bf16.vlgmr.msra.gmra.mrb[24].mxu0 %vm3748_vm3, %v3932_v53 }
 0x4c9   : > { %v5299_v16 = vpop.f32.mrb[16].mxu1 }
 0x4ca   : > { %v3973_v0 = vpop.f32.mrb[17].mxu1 }
 0x4cb   : > { %v5300_v32 = vpop.f32.mrb[18].mxu1 }
 0x4cc   : > { %v3976_v58 = vpop.f32.mrb[19].mxu1 }
 0x4d2   : > { %v5311_v27 = vpop.f32.mrb[20].mxu0 }
 0x4d3   : > { %v4028_v51 = vpop.f32.mrb[21].mxu0 }
 0x4d4   : > { %v6771_v61 = vpop.f32.mrb[22].mxu0 }
 0x4d5   : > { %v6773_v20 = vpop.f32.mrb[23].mxu0 }
 0x4e7   : > { %v5323_v40 = vpop.f32.mrb[20].mxu1 }
 0x4e8   : > { %v4289_v4 = vcombine.low %v5299_v16, %v5323_v40  ;;  %v4290_v33 = vcombine.high %v5299_v16, %v5323_v40  ;;  %v4083_v52 = vpop.f32.mrb[21].mxu1 }
 0x4e9   : > { %v4153_v11 = vcombine.low %v3973_v0, %v4083_v52  ;;  %v4154_v13 = vcombine.high %v3973_v0, %v4083_v52  ;;  %v5324_v54 = vpop.f32.mrb[22].mxu1 }
 0x4ea   : > { %v4357_v57 = vcombine.low %v5300_v32, %v5324_v54  ;;  %v4358_v14 = vcombine.high %v5300_v32, %v5324_v54  ;;  %v4086_v41 = vpop.f32.mrb[23].mxu1  ;;  %v4297_v29 = vrot.slane %v4289_v4, %v5763_v7  ;;  %v4304_v23 = vrot.slane %v4290_v33, %v5763_v7 }
 0x4eb   : > { %v4221_v48 = vcombine.low %v3976_v58, %v4086_v41  ;;  %v4222_v47 = vcombine.high %v3976_v58, %v4086_v41  ;;  %v4161_v63 = vrot.slane %v4153_v11, %v5763_v7  ;;  %v4168_v2 = vrot.slane %v4154_v13, %v5763_v7 }
 0x4ec   : > { %v6780_v3 = vrot.slane %v4357_v57, %v5763_v7  ;;  %v6783_v5 = vrot.slane %v4358_v14, %v5763_v7 }
 0x4ed   : > { %v6786_v21 = vrot.slane %v4221_v48, %v5763_v7  ;;  %v6789_v59 = vrot.slane %v4222_v47, %v5763_v7 }
 0x524   : > { %v5335_v30 = vpop.f32.mrb[24].mxu0 }
 0x525   : > { %v4305_v62 = vcombine.low %v5311_v27, %v5335_v30  ;;  %v4306_v36 = vcombine.high %v5311_v27, %v5335_v30  ;;  %v4138_v44 = vpop.f32.mrb[25].mxu0 }
 0x526   : > { %v4169_v37 = vcombine.low %v4028_v51, %v4138_v44  ;;  %v4170_v9 = vcombine.high %v4028_v51, %v4138_v44  ;;  %v5336_v12 = vpop.f32.mrb[26].mxu0 }
 0x527   : > { %v4313_v26 = vrot.slane %v4305_v62, %v5763_v7  ;;  %v4320_v24 = vrot.slane %v4306_v36, %v5763_v7  ;;  %v4373_v43 = vcombine.low %v6771_v61, %v5336_v12  ;;  %v4374_v25 = vcombine.high %v6771_v61, %v5336_v12  ;;  %v4141_v50 = vpop.f32.mrb[27].mxu0 }
 0x528   : > { %v4177_v42 = vrot.slane %v4169_v37, %v5763_v7  ;;  %v4184_v28 = vrot.slane %v4170_v9, %v5763_v7  ;;  %v4237_v49 = vcombine.low %v6773_v20, %v4141_v50  ;;  %v4238_v8 = vcombine.high %v6773_v20, %v4141_v50 }
 0x529   : > { %v4321_v55 = vcombine.low %v4297_v29, %v4313_v26  ;;  %v4322_v10 = vcombine.high %v4297_v29, %v4313_v26  ;;  %v4337_v34 = vcombine.low %v4304_v23, %v4320_v24  ;;  %v4338_v60 = vcombine.high %v4304_v23, %v4320_v24 }
 0x52a   : > { %v4185_v22 = vcombine.low %v4161_v63, %v4177_v42  ;;  %v4186_v45 = vcombine.high %v4161_v63, %v4177_v42  ;;  %v4201_v39 = vcombine.low %v4168_v2, %v4184_v28  ;;  %v4202_v38 = vcombine.high %v4168_v2, %v4184_v28 }
 0x52b   : > { %v4329_v18 = vrot.slane %v4321_v55, %v5768_v17  ;;  %v4336_v1 = vrot.slane %v4322_v10, %v5768_v17  ;;  %v4345_v46 = vrot.slane %v4337_v34, %v5768_v17  ;;  %v4352_v35 = vrot.slane %v4338_v60, %v5768_v17 }
 0x52c   : > { %v4193_v6 = vrot.slane %v4185_v22, %v5768_v17  ;;  %v4200_v15 = vrot.slane %v4186_v45, %v5768_v17  ;;  %v4209_v31 = vrot.slane %v4201_v39, %v5768_v17  ;;  %v4216_v19 = vrot.slane %v4202_v38, %v5768_v17 }
 0x52d   : > { %v4561_v56 = vcombine.low %v4329_v18, %v4336_v1  ;;  %v5127_v53 = vcombine.high %v4329_v18, %v4336_v1  ;;  %v4577_v16 = vcombine.low %v4345_v46, %v4352_v35  ;;  %v5128_v0 = vcombine.high %v4345_v46, %v4352_v35 }
 0x52e   : > { %v4425_v32 = vcombine.low %v4193_v6, %v4200_v15  ;;  %v5123_v58 = vcombine.high %v4193_v6, %v4200_v15  ;;  %v4441_v27 = vcombine.low %v4209_v31, %v4216_v19  ;;  %v5124_v51 = vcombine.high %v4209_v31, %v4216_v19 }
 0x52f   : > { %v4568_v61 = vrot.slane %v4561_v56, %v5763_v7  ;;  %v4576_v20 = vrot.slane %v5127_v53, %v5763_v7  ;;  %v4584_v40 = vrot.slane %v4577_v16, %v5763_v7  ;;  %v4592_v4 = vrot.slane %v5128_v0, %v5763_v7 }
 0x530   : > { %v6812_v33 = vrot.slane %v4425_v32, %v5763_v7  ;;  %v6815_v52 = vrot.slane %v5123_v58, %v5763_v7  ;;  %v6818_v11 = vrot.slane %v4441_v27, %v5763_v7  ;;  %v6821_v13 = vrot.slane %v5124_v51, %v5763_v7 }
 0x531   : > { %v4381_v54 = vrot.slane %v4373_v43, %v5763_v7  ;;  %v4388_v57 = vrot.slane %v4374_v25, %v5763_v7  ;;  %v4245_v14 = vrot.slane %v4237_v49, %v5763_v7  ;;  %v4252_v41 = vrot.slane %v4238_v8, %v5763_v7 }
 0x532   : > { %v4594_v48 = vcombine.high %v4568_v61, %v4576_v20  ;;  %v4610_v47 = vcombine.high %v4584_v40, %v4592_v4  ;;  %v4593_v29 = vcombine.low %v4568_v61, %v4576_v20  ;;  %v4609_v23 = vcombine.low %v4584_v40, %v4592_v4 }
 0x533   : > { %v4389_v63 = vcombine.low %v6780_v3, %v4381_v54  ;;  %v4390_v2 = vcombine.high %v6780_v3, %v4381_v54  ;;  %v4405_v30 = vcombine.low %v6783_v5, %v4388_v57  ;;  %v4406_v62 = vcombine.high %v6783_v5, %v4388_v57 }
 0x534   : > { %v4253_v36 = vcombine.low %v6786_v21, %v4245_v14  ;;  %v4254_v44 = vcombine.high %v6786_v21, %v4245_v14  ;;  %v4269_v37 = vcombine.low %v6789_v59, %v4252_v41  ;;  %v4270_v9 = vcombine.high %v6789_v59, %v4252_v41 }
 0x535   : > { %v4397_v12 = vrot.slane %v4389_v63, %v5768_v17  ;;  %v4404_v26 = vrot.slane %v4390_v2, %v5768_v17  ;;  %v4413_v24 = vrot.slane %v4405_v30, %v5768_v17  ;;  %v4420_v3 = vrot.slane %v4406_v62, %v5768_v17 }
 0x536   : > { %v4261_v43 = vrot.slane %v4253_v36, %v5768_v17  ;;  %v4268_v5 = vrot.slane %v4254_v44, %v5768_v17  ;;  %v4277_v25 = vrot.slane %v4269_v37, %v5768_v17  ;;  %v4284_v21 = vrot.slane %v4270_v9, %v5768_v17 }
 0x537   : > { %v4629_v50 = vcombine.low %v4397_v12, %v4404_v26  ;;  %v5129_v42 = vcombine.high %v4397_v12, %v4404_v26  ;;  %v4645_v28 = vcombine.low %v4413_v24, %v4420_v3  ;;  %v5130_v59 = vcombine.high %v4413_v24, %v4420_v3  ;;  %v5446_v26 = vld [vmem:[%s6978_s8] sm:$0xff]  }
 0x538   : > { %v4493_v49 = vcombine.low %v4261_v43, %v4268_v5  ;;  %v5125_v8 = vcombine.high %v4261_v43, %v4268_v5  ;;  %v4509_v55 = vcombine.low %v4277_v25, %v4284_v21  ;;  %v5126_v10 = vcombine.high %v4277_v25, %v4284_v21  ;;  %5337 = vmatprep.subr.bf16.mxu1 %v5446_v26 }
 0x539   : > { %v4636_v34 = vrot.slane %v4629_v50, %v5763_v7  ;;  %v4644_v60 = vrot.slane %v5129_v42, %v5763_v7  ;;  %v4652_v22 = vrot.slane %v4645_v28, %v5763_v7  ;;  %v4660_v45 = vrot.slane %v5130_v59, %v5763_v7  ;;  %5338 = vmatpush3.bf16.msra.mxu1 %v5446_v26 }
 0x53a   : > { %v4500_v39 = vrot.slane %v4493_v49, %v5763_v7  ;;  %v4508_v38 = vrot.slane %v5125_v8, %v5763_v7  ;;  %v4516_v18 = vrot.slane %v4509_v55, %v5763_v7  ;;  %v4524_v1 = vrot.slane %v5126_v10, %v5763_v7  ;;  %v5447_v49 = vld [vmem:[%s6978_s8 + $0x8] sm:$0xff]  }
 0x53b   : > { %v4608_v46 = vrot.slane %v4594_v48, %v5768_v17  ;;  %v4624_v35 = vrot.slane %v4610_v47, %v5768_v17  ;;  %v4662_v6 = vcombine.high %v4636_v34, %v4644_v60  ;;  %v4678_v15 = vcombine.high %v4652_v22, %v4660_v45  ;;  %5339 = vmatprep.subr.bf16.mxu1 %v5447_v49 }
 0x53c   : > { %v6854_v31 = vrot.slane %v4593_v29, %v5768_v17  ;;  %v6857_v19 = vrot.slane %v4609_v23, %v5768_v17  ;;  %v4661_v56 = vcombine.low %v4636_v34, %v4644_v60  ;;  %v4677_v53 = vcombine.low %v4652_v22, %v4660_v45 }
 0x53d   : > { %v4627_v16 = vcombine.low %v4608_v46, %v4624_v35  ;;  %v4676_v0 = vrot.slane %v4662_v6, %v5768_v17  ;;  %v4692_v32 = vrot.slane %v4678_v15, %v5768_v17  ;;  %v4458_v7 = vcombine.high %v6812_v33, %v6815_v52  ;;  %5340 = vmatpush3.bf16.msra.mxu1 %v5447_v49  ;;  %v5523_v49 = vld [vmem:[%s5686_s25 + $0x18] sm:$0xff] }
 0x53e   : > { %v4625_v58 = vcombine.low %v6854_v31, %v6857_v19  ;;  %v4626_v27 = vcombine.high %v6854_v31, %v6857_v19  ;;  %v6868_v51 = vrot.slane %v4661_v56, %v5768_v17  ;;  %v6871_v61 = vrot.slane %v4677_v53, %v5768_v17 }
 0x53f   : > { %v4695_v20 = vcombine.low %v4676_v0, %v4692_v32  ;;  %v4472_v40 = vrot.slane %v4458_v7, %v5768_v17  ;;  %v4474_v4 = vcombine.high %v6818_v11, %v6821_v13  ;;  %v4526_v54 = vcombine.high %v4500_v39, %v4508_v38 }
 0x540   : > { %v4694_v57 = vcombine.high %v6868_v51, %v6871_v61  ;;  %v4693_v14 = vcombine.low %v6868_v51, %v6871_v61  ;;  %v4542_v41 = vcombine.high %v4516_v18, %v4524_v1  ;;  %v4457_v48 = vcombine.low %v6812_v33, %v6815_v52 }
 0x541   : > { %v5415_v47 = vpack.i.bf16 %v4695_v20, %v4627_v16  ;;  %v4488_v29 = vrot.slane %v4474_v4, %v5768_v17  ;;  %v4540_v23 = vrot.slane %v4526_v54, %v5768_v17  ;;  %v4473_v63 = vcombine.low %v6818_v11, %v6821_v13 }
 0x542   : > { %v5410_v2 = vpack.i.bf16 %v4694_v57, %v4626_v27  ;;  %v4556_v30 = vrot.slane %v4542_v41, %v5768_v17  ;;  %v4465_v62 = vrot.slane %v4457_v48, %v5768_v17  ;;  %v4525_v36 = vcombine.low %v4500_v39, %v4508_v38  ;;  %v4839_v57 = vld [vmem:[%s430_s30] sm:$0xff] }
 0x543   : > { %5416 = vrot.lane.b32.xlu1 %v5415_v47, %s5570_s13  ;;  %v4492_v44 = vcombine.high %v4472_v40, %v4488_v29  ;;  %v4481_v33 = vrot.slane %v4473_v63, %v5768_v17  ;;  %v4541_v52 = vcombine.low %v4516_v18, %v4524_v1  ;;  %v4491_v37 = vcombine.low %v4472_v40, %v4488_v29  ;;  %v5131_v48 = vld [vmem:[%s6979_s9] ss:$0 sm:$0xff] }
 0x544   : > { %5411 = vrot.lane.b32.xlu0 %v5410_v2, %s5571_s29  ;;  %v4560_v9 = vcombine.high %v4540_v23, %v4556_v30  ;;  %v4533_v12 = vrot.slane %v4525_v36, %v5768_v17  ;;  %v4559_v11 = vcombine.low %v4540_v23, %v4556_v30  ;;  %v4628_v13 = vcombine.high %v4608_v46, %v4624_v35 }
 0x545   : > { %v4489_v24 = vcombine.low %v4465_v62, %v4481_v33  ;;  %v4490_v3 = vcombine.high %v4465_v62, %v4481_v33  ;;  %v4549_v43 = vrot.slane %v4541_v52, %v5768_v17  ;;  %v4696_v5 = vcombine.high %v4676_v0, %v4692_v32 }
 0x546   : > { %v5430_v25 = vpack.i.bf16 %v4560_v9, %v4492_v44  ;;  %v5425_v21 = vpack.i.bf16 %v4559_v11, %v4491_v37  ;;  %v4840_v41 = vunpack.c.0.s8 %v4839_v57  ;;  %v4841_v47 = vunpack.c.1.s8 %v4839_v57 }
 0x547   : > { %v4558_v50 = vcombine.high %v4533_v12, %v4549_v43  ;;  %v4557_v42 = vcombine.low %v4533_v12, %v4549_v43  ;;  %v5435_v28 = vpack.i.bf16 %v4696_v5, %v4628_v13  ;;  %v4843_v29 = vunpack.c.3.s8 %v4839_v57 }
 0x548   : > { %5431 = vrot.lane.b32.xlu0 %v5430_v25, %s5572_s14  ;;  %v4844_v2 = vcvt.s32.f32 %v4840_v41  ;;  %v4845_v33 = vcvt.s32.f32 %v4841_v47  ;;  %v5521_v25 = vld [vmem:[%s5686_s25 + $0x8] sm:$0xff] }
 0x549   : > { %v5420_v59 = vpack.i.bf16 %v4558_v50, %v4490_v3  ;;  %v4847_v52 = vcvt.s32.f32 %v4843_v29  ;;  %v5522_v50 = vld [vmem:[%s5686_s25 + $0x10] sm:$0xff] }
 0x54b   : > { %5421 = vrot.lane.b32.xlu1 %v5420_v59, %s5571_s29 }
 0x54f   : > { %5426 = vrot.lane.b32.xlu1 %v5425_v21, %s5570_s13 }
 0x553   : > { %5436 = vrot.lane.b32.xlu1 %v5435_v28, %s5572_s14 }
 0x5b5   : > { %v5417_v17 = vpop.permute.xlu1 %5416 }
 0x5b6   : > { %v5412_v8 = vpop.permute.xlu0 %5411  ;;  %v5419_v38 = vunpack.i.h.bf16 %v5417_v17  ;;  %v5418_v18 = vunpack.i.l.bf16 %v5417_v17 }
 0x5b7   : > { %v5414_v60 = vunpack.i.h.bf16 %v5412_v8  ;;  %v5413_v22 = vunpack.i.l.bf16 %v5412_v8 }
 0x5b9   : > { %v4747_v53 = vsel %vm3431_vm1, %v4625_v58, %v5413_v22  ;;  %v4748_v16 = vsel %vm3431_vm1, %v4693_v14, %v5414_v60  ;;  %v4842_v14 = vunpack.c.2.s8 %v4839_v57 }
 0x5ba   : > { %v5432_v45 = vpop.permute.xlu0 %5431  ;;  %v4752_v40 = vsel %vm4749_vm7, %v4747_v53, %v5418_v18  ;;  %v4753_v51 = vsel %vm4749_vm7, %v4748_v16, %v5419_v38 }
 0x5bb   : > { %v5434_v35 = vunpack.i.h.bf16 %v5432_v45  ;;  %v5433_v6 = vunpack.i.l.bf16 %v5432_v45  ;;  %v4846_v63 = vcvt.s32.f32 %v4842_v14 }
 0x5bd   : > { %v5422_v55 = vpop.permute.xlu1 %5421 }
 0x5be   : > { %v5424_v10 = vunpack.i.h.bf16 %v5422_v55  ;;  %v5423_v34 = vunpack.i.l.bf16 %v5422_v55 }
 0x5c0   : > { %v4745_v15 = vsel %vm3431_vm1, %v4489_v24, %v5423_v34  ;;  %v4746_v56 = vsel %vm3431_vm1, %v4557_v42, %v5424_v10  ;;  %v5520_v24 = vld [vmem:[%s5686_s25] sm:$0xff]  ;;  %s5044_s25 = sshll.u32 %s5546_s17, 2 }
 0x5c1   : > { %v5427_v39 = vpop.permute.xlu1 %5426  ;;  %p434_p7 = scmp.lt.s32.totalorder %s5044_s25, 7 }
 0x5c2   : > { %v5429_v1 = vunpack.i.h.bf16 %v5427_v39  ;;  %v5428_v46 = vunpack.i.l.bf16 %v5427_v39 }
 0x5c3   : > { %s7009_s25 = smov (!%p434_p7, %s5044_s25), 7 }
 0x5c4   : > { %v4750_v0 = vsel %vm4749_vm7, %v4745_v15, %v5428_v46  ;;  %v4751_v32 = vsel %vm4749_vm7, %v4746_v56, %v5429_v1  ;;  %s437_s16 = sadd.s32 %s5045_s15, %s7009_s25 }
 0x5c5   : > { %v5437_v7 = vpop.permute.xlu1 %5436  ;;  %v4755_v27 = vsel %vm4754_vm8, %v4750_v0, %v5433_v6  ;;  %v4756_v20 = vsel %vm4754_vm8, %v4751_v32, %v5434_v35  ;;  %s5046_s26 = sshll.u32 %s437_s16, 3 }
 0x5c6   : > { %v5439_v31 = vunpack.i.h.bf16 %v5437_v7  ;;  %v5438_v19 = vunpack.i.l.bf16 %v5437_v7  ;;  %v4759_v58 = vpack.c.bf16 %v4756_v20, %v4755_v27  ;;  %s439_s29 = scalar_lea.vmem %s6981_s11, %s5046_s26 }
 0x5c8   : > { %v4758_v61 = vsel %vm4754_vm8, %v4753_v51, %v5439_v31  ;;  %v4757_v4 = vsel %vm4754_vm8, %v4752_v40, %v5438_v19  ;;  %5341 = vmatprep.mubr.msk.bf16.mxu1 %vm485_vm0, %v4759_v58 }
 0x5c9   : > { %v4760_v54 = vpack.c.bf16 %v4758_v61, %v4757_v4 }
 0x5cb   : > { %5342 = vmatmul.mubr.msk.bf16.vlgmr.msra.gmra.mrb[24].mxu1 %vm485_vm0, %v4760_v54 }
 0x69e   : > { %v5343_v23 = vpop.f32.mrb[24].mxu1 }
 0x69f   : > { %v4833_v30 = vadd.f32 %v5343_v23, %v5131_v48  ;;  %v4824_v62 = vpop.f32.mrb[25].mxu1  ;;  %v5137_v23 = vld [vmem:[%s6980_s10 + $0x1] ss:$0 sm:$0xff] }
 0x6a0   : > { %v4825_v36 = vadd.f32 %v5131_v48, %v4824_v62  ;;  %v5344_v44 = vpop.f32.mrb[26].mxu1 }
 0x6a1   : > { %v4827_v37 = vpop.f32.mrb[27].mxu1  ;;  %v4850_v9 = vmul.f32 %v4846_v63, %v4833_v30  ;;  %v4836_v11 = vadd.f32 %v5344_v44, %v5131_v48 }
 0x6a2   : > { %v4848_v12 = vmul.f32 %v4844_v2, %v4825_v36  ;;  %v4828_v13 = vadd.f32 %v5131_v48, %v4827_v37  ;;  %v5136_v48 = vld [vmem:[%s6980_s10] ss:$0 sm:$0xff] }
 0x6a3   : > { %v4851_v43 = vmul.f32 %v4847_v52, %v4836_v11  ;;  %v4854_v42 = vadd.f32 %v5522_v50, %v4850_v9 }
 0x6a4   : > { %v4849_v26 = vmul.f32 %v4845_v33, %v4828_v13  ;;  %v4852_v3 = vadd.f32 %v5520_v24, %v4848_v12 }
 0x6a5   : > { %v4864_v59 = vsel %vm485_vm0, %v4854_v42, 0.0  ;;  %v4855_v17 = vadd.f32 %v5523_v49, %v4851_v43 }
 0x6a6   : > { %v4858_v5 = vsel %vm485_vm0, %v4852_v3, 0.0  ;;  %v4853_v21 = vadd.f32 %v5521_v25, %v4849_v26 }
 0x6a7   : > { %4859 = vadd.xlane.f32.xlu0 %v4858_v5  ;;  %v4867_v8 = vsel %vm485_vm0, %v4855_v17, 0.0 }
 0x6a8   : > { %v4861_v28 = vsel %vm485_vm0, %v4853_v21, 0.0 }
 0x6a9   : > { %4862 = vadd.xlane.f32.xlu1 %v4861_v28 }
 0x6ab   : > { %4865 = vadd.xlane.f32.xlu0 %v4864_v59 }
 0x6af   : > { %4868 = vadd.xlane.f32.xlu0 %v4867_v8 }
 0x734   : > { %v4860_v55 = vpop.xlane.xlu0 %4859 }
 0x735   : > { %v4871_v10 = vmul.f32 0.03125, %v4860_v55 }
 0x736   : > { %v4863_v34 = vpop.xlane.xlu1 %4862 }
 0x737   : > { %v4875_v60 = vsub.f32 %v4852_v3, %v4871_v10  ;;  %v4872_v22 = vmul.f32 0.03125, %v4863_v34 }
 0x738   : > { %v4866_v45 = vpop.xlane.xlu0 %4865 }
 0x739   : > { %v4876_v39 = vsub.f32 %v4853_v21, %v4872_v22  ;;  %v4873_v38 = vmul.f32 0.03125, %v4866_v45  ;;  %v4879_v18 = vmul.f32 %v4875_v60, %v4875_v60 }
 0x73b   : > { %v4877_v1 = vsub.f32 %v4854_v42, %v4873_v38  ;;  %v4883_v46 = vsel %vm485_vm0, %v4879_v18, 0.0  ;;  %v4880_v35 = vmul.f32 %v4876_v39, %v4876_v39 }
 0x73c   : > { %4884 = vadd.xlane.f32.xlu1 %v4883_v46  ;;  %v4869_v6 = vpop.xlane.xlu0 %4868 }
 0x73d   : > { %v4874_v15 = vmul.f32 0.03125, %v4869_v6  ;;  %v4886_v56 = vsel %vm485_vm0, %v4880_v35, 0.0  ;;  %v4881_v53 = vmul.f32 %v4877_v1, %v4877_v1 }
 0x73e   : > { %4887 = vadd.xlane.f32.xlu0 %v4886_v56 }
 0x73f   : > { %v4878_v16 = vsub.f32 %v4855_v17, %v4874_v15  ;;  %v4889_v0 = vsel %vm485_vm0, %v4881_v53, 0.0 }
 0x740   : > { %4890 = vadd.xlane.f32.xlu1 %v4889_v0 }
 0x741   : > { %v4882_v32 = vmul.f32 %v4878_v16, %v4878_v16 }
 0x743   : > { %v4892_v7 = vsel %vm485_vm0, %v4882_v32, 0.0 }
 0x744   : > { %4893 = vadd.xlane.f32.xlu0 %v4892_v7 }
 0x7c9   : > { %v4885_v27 = vpop.xlane.xlu1 %4884 }
 0x7ca   : > { %v4895_v20 = vmul.f32 0.03125, %v4885_v27 }
 0x7cb   : > { %v4888_v31 = vpop.xlane.xlu0 %4887 }
 0x7cc   : > { %v4899_v19 = vadd.f32 1e-05, %v4895_v20  ;;  %v4896_v58 = vmul.f32 0.03125, %v4888_v31 }
 0x7cd   : > { %v4891_v40 = vpop.xlane.xlu1 %4890 }
 0x7ce   : > { %5512 = vrsqrt.f32 %v4899_v19  ;;  %v4900_v51 = vadd.f32 1e-05, %v4896_v58  ;;  %v4897_v61 = vmul.f32 0.03125, %v4891_v40 }
 0x7d0   : > { %5514 = vrsqrt.f32 %v4900_v51  ;;  %v4901_v4 = vadd.f32 1e-05, %v4897_v61 }
 0x7d1   : > { %v4894_v54 = vpop.xlane.xlu0 %4893 }
 0x7d2   : > { %5516 = vrsqrt.f32 %v4901_v4  ;;  %v4898_v57 = vmul.f32 0.03125, %v4894_v54 }
 0x7d4   : > { %v4902_v14 = vadd.f32 1e-05, %v4898_v57 }
 0x7d6   : > { %5518 = vrsqrt.f32 %v4902_v14 }
 0x7d8   : > { %v5513_v41 = vpop.eup %5512 }
 0x7d9   : > { %v4907_v47 = vmul.f32 %v5513_v41, %v4875_v60 }
 0x7da   : > { %v5515_v29 = vpop.eup %5514 }
 0x7db   : > { %v4915_v63 = vmul.f32 %v5136_v48, %v4907_v47  ;;  %v4908_v2 = vmul.f32 %v5515_v29, %v4876_v39 }
 0x7dc   : > { %v5517_v30 = vpop.eup %5516 }
 0x7dd   : > { %v4923_v62 = vadd.f32 %v5137_v23, %v4915_v63  ;;  %v4916_v36 = vmul.f32 %v5136_v48, %v4908_v2  ;;  %v4909_v44 = vmul.f32 %v5517_v30, %v4877_v1 }
 0x7df   : > { %4927 = vst.msk [vmem:[%s439_s29] sm:$0xff] %vm485_vm0, %v4923_v62  ;;  %v4924_v33 = vadd.f32 %v5137_v23, %v4916_v36  ;;  %v4917_v52 = vmul.f32 %v5136_v48, %v4909_v44 }
 0x7e0   : > { %v5519_v37 = vpop.eup %5518 }
 0x7e1   : > { %4928 = vst.msk [vmem:[%s439_s29 + $0x8] sm:$0xff] %vm485_vm0, %v4924_v33  ;;  %v4925_v9 = vadd.f32 %v5137_v23, %v4917_v52  ;;  %v4910_v12 = vmul.f32 %v5519_v37, %v4878_v16 }
 0x7e3   : > { %4929 = vst.msk [vmem:[%s439_s29 + $0x10] sm:$0xff] %vm485_vm0, %v4925_v9  ;;  %v4918_v11 = vmul.f32 %v5136_v48, %v4910_v12 }
 0x7e5   : > { %v4926_v13 = vadd.f32 %v5137_v23, %v4918_v11 }
 0x7e7   : > { %4930 = vst.msk [vmem:[%s439_s29 + $0x18] sm:$0xff] %vm485_vm0, %v4926_v13 }
 0x7e8 PF: > { %s21_s21 = sadd.s32 1, %s5562_s21   ;;  %s6996_s17 = smov %s5554_s19 }
 0x7e9   : > { %p18_p8 = scmp.ge.s32.totalorder %s21_s21, 6   ;;  %s6997_s18 = smov %s5558_s20 }
 0x7ea   : > { %s6998_s19 = smov %s7001_s22  ;;  %s6999_s20 = smov %s7005_s23 }
 0x7eb   :  { %20 = sbr.rel (!%p18_p8) target bundleno = 3 (0x3), region = 98 }

</bundles_post_ra>
